<compile_context>
chip_gen: v7x
topology: tpu7x:2x2x1
jax: 0.10.0
libtpu: 0.0.40
codegen_flags: <defaults>
</compile_context>

<pallas_src>
import jax
import jax.numpy as jnp
from jax import lax
from jax.experimental import pallas as pl
from jax.experimental.pallas import tpu as pltpu


def _make_rdb_kernel(C, G0, G, H, W):
    P = H * W

    def kernel(*refs):
        x_ref = refs[0]                                  # (G0, P) f32
        w_refs = [refs[1 + 2 * c] for c in range(C)]     # (G, 9*Cin_c) f32
        b_refs = [refs[2 + 2 * c] for c in range(C)]     # (G, 1) f32
        lff_refs = [refs[1 + 2 * C + s] for s in range(C + 1)]  # (G0, S_s) f32
        blff_ref = refs[2 + 3 * C]                       # (G0, 1) f32
        out_ref = refs[3 + 3 * C]                        # (G0, P) f32
        col_ref = refs[4 + 3 * C]                        # (9*(G0+(C-1)*G), P) f32

        # ---- per-tap border-validity masks over the pixel (lane) axis ----
        lane = lax.broadcasted_iota(jnp.int32, (1, P), 1)
        if W > 0 and (W & (W - 1)) == 0:                 # power-of-two fast path
            w_idx = lane & (W - 1)
            h_idx = lane >> (W - 1).bit_length()
        else:
            w_idx = lane % W
            h_idx = lane // W
        masks = {}
        for dy in range(3):
            for dx in range(3):
                conds = []
                if dy == 0:
                    conds.append(h_idx >= 1)
                if dy == 2:
                    conds.append(h_idx <= H - 2)
                if dx == 0:
                    conds.append(w_idx >= 1)
                if dx == 2:
                    conds.append(w_idx <= W - 2)
                m = None
                for cnd in conds:
                    m = cnd if m is None else jnp.logical_and(m, cnd)
                masks[(dy, dx)] = m                      # None => always valid

        def emit_taps(seg, base):
            # seg: (S, P) feature segment.  Write its 9 shifted copies into
            # col_ref rows [9*base + t*S, 9*base + (t+1)*S); every store is a
            # dense, sublane-tile-aligned (S, P) block.
            S = seg.shape[0]
            for dy in range(3):
                for dx in range(3):
                    t = dy * 3 + dx
                    off = (dy - 1) * W + (dx - 1)        # pixel-index offset
                    if off == 0:
                        shifted = seg
                    else:
                        shifted = pltpu.roll(seg, shift=(-off) % P, axis=1)
                    m = masks[(dy, dx)]
                    if m is not None:
                        shifted = jnp.where(m, shifted, 0.0)
                    r0 = 9 * base + t * S
                    col_ref[r0:r0 + S, :] = shifted

        # ---- forward pass ----
        x = x_ref[...]                                   # (G0, P) f32
        # residual + LFF bias + LFF contribution of the input segment
        y = x + blff_ref[...] + jnp.dot(lff_refs[0][...], x,
                                        preferred_element_type=jnp.float32)
        emit_taps(x, 0)

        cin = G0
        for c in range(C):
            # one big-K matmul per dense layer: (G, 9*cin) @ (9*cin, P)
            pre = jnp.dot(w_refs[c][...], col_ref[0:9 * cin, :],
                          preferred_element_type=jnp.float32)
            out = jnp.maximum(pre + b_refs[c][...], 0.0)           # (G, P)
            # distributed LFF: accumulate this segment's 1x1-conv contribution
            y = y + jnp.dot(lff_refs[c + 1][...], out,
                            preferred_element_type=jnp.float32)
            if c < C - 1:                                # last layer feeds only LFF
                emit_taps(out, cin)
            cin += G

        out_ref[...] = y                                 # one dense (G0, P) store

    return kernel


def _reorder_conv_weight(w, G0, G, c):
    """(3,3,Cin,G) HWIO -> (G, 9*Cin) with columns ordered (segment, tap, chan).

    Segment order matches the dense-concat feature order (input channels
    first, then each previous layer's G outputs); within a segment of width S
    the column index is t*S + k with t = dy*3 + dx, matching emit_taps."""
    segs = [(0, G0)] + [(G0 + j * G, G) for j in range(c)]
    blocks = []
    for base, width in segs:
        blocks.append(w[:, :, base:base + width, :].reshape(9 * width, w.shape[-1]))
    return jnp.concatenate(blocks, axis=0).T.astype(jnp.float32)   # (G, 9*Cin)


def rdb_forward_pallas(x_nchw, params, *, G0, G, C):
    N, Cin, H, W = x_nchw.shape
    P = H * W
    assert Cin == G0
    # Lane-dense / sublane-aligned assumptions for this kernel.
    assert P % 128 == 0, "H*W must be a multiple of 128 for lane-dense stores"
    assert G0 % 8 == 0 and G % 8 == 0, "channel widths must be sublane-aligned"
    conv_ws, conv_bs, w_lff, b_lff = params

    # NCHW -> (N, C, H*W): channel-major, pixels on lanes.  Free reshape.
    x2d = x_nchw.reshape(N, G0, P).astype(jnp.float32)

    inputs = [x2d]
    in_specs = [pl.BlockSpec((None, G0, P), lambda n: (n, 0, 0))]
    for c in range(C):
        wt = _reorder_conv_weight(conv_ws[c], G0, G, c)            # (G, 9*cin)
        b = conv_bs[c].reshape(G, 1).astype(jnp.float32)
        inputs += [wt, b]
        in_specs += [pl.BlockSpec(wt.shape, lambda n: (0, 0)),
                     pl.BlockSpec((G, 1), lambda n: (0, 0))]
    # LFF weight pre-split per feature segment (distributed 1x1 conv).
    seg_bounds = [(0, G0)] + [(G0 + j * G, G) for j in range(C)]
    for base, width in seg_bounds:
        part = w_lff[base:base + width, :].T.astype(jnp.float32)   # (G0, width)
        inputs.append(part)
        in_specs.append(pl.BlockSpec(part.shape, lambda n: (0, 0)))
    inputs.append(b_lff.reshape(G0, 1).astype(jnp.float32))
    in_specs.append(pl.BlockSpec((G0, 1), lambda n: (0, 0)))

    out_spec = pl.BlockSpec((None, G0, P), lambda n: (n, 0, 0))
    col_rows = 9 * (G0 + (C - 1) * G)
    scratch = [pltpu.VMEM((col_rows, P), jnp.float32)]             # im2col^T

    y = pl.pallas_call(
        _make_rdb_kernel(C, G0, G, H, W),
        out_shape=jax.ShapeDtypeStruct((N, G0, P), jnp.float32),
        grid_spec=pltpu.PrefetchScalarGridSpec(
            num_scalar_prefetch=0,
            grid=(N,),
            in_specs=in_specs,
            out_specs=out_spec,
            scratch_shapes=scratch,
        ),
        compiler_params=pltpu.CompilerParams(dimension_semantics=("parallel",)),
    )(*inputs)

    return y.reshape(N, G0, H, W)                                  # NCHW


def init_rdb_params(key, G0, G, C):
    """Deterministic synthetic parameters (HWIO conv weights)."""
    conv_ws, conv_bs = [], []
    for c in range(C):
        key, k1, k2 = jax.random.split(key, 3)
        cin = G0 + c * G
        conv_ws.append(0.1 * jax.random.normal(k1, (3, 3, cin, G), jnp.float32))
        conv_bs.append(0.1 * jax.random.normal(k2, (G,), jnp.float32))
    key, k1, k2 = jax.random.split(key, 3)
    Ctot = G0 + C * G
    w_lff = 0.1 * jax.random.normal(k1, (Ctot, G0), jnp.float32)
    b_lff = 0.1 * jax.random.normal(k2, (G0,), jnp.float32)
    return conv_ws, conv_bs, w_lff, b_lff


def rdb_forward_reference(x_nchw, params, *, G0, G, C):
    """Pure-JAX f32 reference mirroring the PyTorch RDB forward."""
    conv_ws, conv_bs, w_lff, b_lff = params
    x = jnp.transpose(x_nchw, (0, 2, 3, 1))
    feat = x
    for c in range(C):
        out = lax.conv_general_dilated(
            feat, conv_ws[c], window_strides=(1, 1), padding="SAME",
            dimension_numbers=("NHWC", "HWIO", "NHWC"))
        out = jnp.maximum(out + conv_bs[c], 0.0)
        feat = jnp.concatenate([feat, out], axis=-1)
    y = jnp.einsum("nhwc,co->nhwo", feat, w_lff) + b_lff
    y = y + x
    return jnp.transpose(y, (0, 3, 1, 2))


if __name__ == "__main__":
    # RDB(growRate0=8, growRate=8, nConvLayers=3), input (N=2, G0=8, H=16, W=16)
    G0, G, C = 8, 8, 3
    N, H, W = 2, 16, 16

    key = jax.random.PRNGKey(0)
    kx, kp = jax.random.split(key)
    x = jax.random.normal(kx, (N, G0, H, W), jnp.float32)
    params = init_rdb_params(kp, G0, G, C)

    y = rdb_forward_pallas(x, params, G0=G0, G=G, C=C)
    y = jax.block_until_ready(y)

    y_ref = rdb_forward_reference(x, params, G0=G0, G=G, C=C)
    err = float(jnp.max(jnp.abs(y - y_ref)))
    # f32 path end-to-end; tolerance still covers a possible reduced-precision
    # MXU pass.  Indexing/layout bugs would produce O(1) errors.
    assert err < 5e-2, f"max abs error vs reference: {err}"
    print("KERNEL_OK")
</pallas_src>

<mosaic_0001>
module attributes {stable_mosaic.version = 11 : i64} {
  func.func @kernel(%arg0: i32, %arg1: memref<1x8x256xf32, #tpu.memory_space<vmem>>, %arg2: memref<8x72xf32, #tpu.memory_space<vmem>>, %arg3: memref<8x1xf32, #tpu.memory_space<vmem>>, %arg4: memref<8x144xf32, #tpu.memory_space<vmem>>, %arg5: memref<8x1xf32, #tpu.memory_space<vmem>>, %arg6: memref<8x216xf32, #tpu.memory_space<vmem>>, %arg7: memref<8x1xf32, #tpu.memory_space<vmem>>, %arg8: memref<8x8xf32, #tpu.memory_space<vmem>>, %arg9: memref<8x8xf32, #tpu.memory_space<vmem>>, %arg10: memref<8x8xf32, #tpu.memory_space<vmem>>, %arg11: memref<8x8xf32, #tpu.memory_space<vmem>>, %arg12: memref<8x1xf32, #tpu.memory_space<vmem>>, %arg13: memref<1x8x256xf32, #tpu.memory_space<vmem>>, %arg14: memref<216x256xf32, #tpu.memory_space<vmem>>) attributes {dimension_semantics = [#tpu.dimension_semantics<parallel>], iteration_bounds = array<i64: 2>, scalar_prefetch = 0 : i64, scratch_operands = 1 : i64, tpu.core_type = #tpu.core_type<tc>, window_params = [{transform_indices = @transform_0, window_bounds = array<i64: 1, 8, 256>}, {pipeline_mode = #tpu.pipeline_mode<synchronous>, transform_indices = @transform_1, window_bounds = array<i64: 8, 72>}, {pipeline_mode = #tpu.pipeline_mode<synchronous>, transform_indices = @transform_2, window_bounds = array<i64: 8, 1>}, {pipeline_mode = #tpu.pipeline_mode<synchronous>, transform_indices = @transform_3, window_bounds = array<i64: 8, 144>}, {pipeline_mode = #tpu.pipeline_mode<synchronous>, transform_indices = @transform_4, window_bounds = array<i64: 8, 1>}, {pipeline_mode = #tpu.pipeline_mode<synchronous>, transform_indices = @transform_5, window_bounds = array<i64: 8, 216>}, {pipeline_mode = #tpu.pipeline_mode<synchronous>, transform_indices = @transform_6, window_bounds = array<i64: 8, 1>}, {pipeline_mode = #tpu.pipeline_mode<synchronous>, transform_indices = @transform_7, window_bounds = array<i64: 8, 8>}, {pipeline_mode = #tpu.pipeline_mode<synchronous>, transform_indices = @transform_8, window_bounds = array<i64: 8, 8>}, {pipeline_mode = #tpu.pipeline_mode<synchronous>, transform_indices = @transform_9, window_bounds = array<i64: 8, 8>}, {pipeline_mode = #tpu.pipeline_mode<synchronous>, transform_indices = @transform_10, window_bounds = array<i64: 8, 8>}, {pipeline_mode = #tpu.pipeline_mode<synchronous>, transform_indices = @transform_11, window_bounds = array<i64: 8, 1>}, {transform_indices = @transform_12, window_bounds = array<i64: 1, 8, 256>}]} {
    %0 = tpu.iota {dimensions = array<i32: 1>} : vector<1x256xi32>
    %c15_i32 = arith.constant 15 : i32
    %1 = vector.broadcast %c15_i32 : i32 to vector<1x256xi32>
    %2 = arith.andi %0, %1 : vector<1x256xi32>
    %c4_i32 = arith.constant 4 : i32
    %3 = vector.broadcast %c4_i32 : i32 to vector<1x256xi32>
    %4 = arith.shrsi %0, %3 : vector<1x256xi32>
    %c1_i32 = arith.constant 1 : i32
    %5 = vector.broadcast %c1_i32 : i32 to vector<1x256xi32>
    %6 = arith.cmpi sge, %4, %5 : vector<1x256xi32>
    %c1_i32_0 = arith.constant 1 : i32
    %7 = vector.broadcast %c1_i32_0 : i32 to vector<1x256xi32>
    %8 = arith.cmpi sge, %2, %7 : vector<1x256xi32>
    %9 = arith.andi %6, %8 : vector<1x256xi1>
    %c1_i32_1 = arith.constant 1 : i32
    %10 = vector.broadcast %c1_i32_1 : i32 to vector<1x256xi32>
    %11 = arith.cmpi sge, %4, %10 : vector<1x256xi32>
    %c1_i32_2 = arith.constant 1 : i32
    %12 = vector.broadcast %c1_i32_2 : i32 to vector<1x256xi32>
    %13 = arith.cmpi sge, %4, %12 : vector<1x256xi32>
    %c14_i32 = arith.constant 14 : i32
    %14 = vector.broadcast %c14_i32 : i32 to vector<1x256xi32>
    %15 = arith.cmpi sle, %2, %14 : vector<1x256xi32>
    %16 = arith.andi %13, %15 : vector<1x256xi1>
    %c1_i32_3 = arith.constant 1 : i32
    %17 = vector.broadcast %c1_i32_3 : i32 to vector<1x256xi32>
    %18 = arith.cmpi sge, %2, %17 : vector<1x256xi32>
    %c14_i32_4 = arith.constant 14 : i32
    %19 = vector.broadcast %c14_i32_4 : i32 to vector<1x256xi32>
    %20 = arith.cmpi sle, %2, %19 : vector<1x256xi32>
    %c14_i32_5 = arith.constant 14 : i32
    %21 = vector.broadcast %c14_i32_5 : i32 to vector<1x256xi32>
    %22 = arith.cmpi sle, %4, %21 : vector<1x256xi32>
    %c1_i32_6 = arith.constant 1 : i32
    %23 = vector.broadcast %c1_i32_6 : i32 to vector<1x256xi32>
    %24 = arith.cmpi sge, %2, %23 : vector<1x256xi32>
    %25 = arith.andi %22, %24 : vector<1x256xi1>
    %c14_i32_7 = arith.constant 14 : i32
    %26 = vector.broadcast %c14_i32_7 : i32 to vector<1x256xi32>
    %27 = arith.cmpi sle, %4, %26 : vector<1x256xi32>
    %c14_i32_8 = arith.constant 14 : i32
    %28 = vector.broadcast %c14_i32_8 : i32 to vector<1x256xi32>
    %29 = arith.cmpi sle, %4, %28 : vector<1x256xi32>
    %c14_i32_9 = arith.constant 14 : i32
    %30 = vector.broadcast %c14_i32_9 : i32 to vector<1x256xi32>
    %31 = arith.cmpi sle, %2, %30 : vector<1x256xi32>
    %32 = arith.andi %29, %31 : vector<1x256xi1>
    %c0 = arith.constant 0 : index
    %c0_10 = arith.constant 0 : index
    %c0_11 = arith.constant 0 : index
    %33 = vector.load %arg1[%c0, %c0_10, %c0_11] : memref<1x8x256xf32, #tpu.memory_space<vmem>>, vector<1x8x256xf32>
    %34 = vector.shape_cast %33 : vector<1x8x256xf32> to vector<8x256xf32>
    %c0_12 = arith.constant 0 : index
    %c0_13 = arith.constant 0 : index
    %35 = vector.load %arg12[%c0_12, %c0_13] : memref<8x1xf32, #tpu.memory_space<vmem>>, vector<8x1xf32>
    %36 = vector.broadcast %35 : vector<8x1xf32> to vector<8x256xf32>
    %37 = arith.addf %34, %36 : vector<8x256xf32>
    %c0_14 = arith.constant 0 : index
    %c0_15 = arith.constant 0 : index
    %38 = vector.load %arg8[%c0_14, %c0_15] : memref<8x8xf32, #tpu.memory_space<vmem>>, vector<8x8xf32>
    %cst = arith.constant dense<0.000000e+00> : vector<8x256xf32>
    %39 = tpu.matmul %38, %34, %cst {dimension_numbers = #tpu.dot_dimension_numbers<[1], [0], [0], [1], [0, 0, 1, 1], [], []>} : vector<8x8xf32>, vector<8x256xf32>, vector<8x256xf32> -> vector<8x256xf32>
    %40 = arith.addf %37, %39 : vector<8x256xf32>
    %c17_i32 = arith.constant 17 : i32
    %41 = tpu.dynamic_rotate %34 by %c17_i32 dim 1 : vector<8x256xf32>, i32 -> vector<8x256xf32>
    %cst_16 = arith.constant 0.000000e+00 : f32
    %42 = vector.shape_cast %9 : vector<1x256xi1> to vector<1x256xi1>
    %43 = vector.broadcast %42 : vector<1x256xi1> to vector<8x256xi1>
    %44 = vector.broadcast %cst_16 : f32 to vector<8x256xf32>
    %45 = arith.select %43, %41, %44 : vector<8x256xi1>, vector<8x256xf32>
    %c0_17 = arith.constant 0 : index
    %c0_18 = arith.constant 0 : index
    %46 = vector.load %arg14[%c0_17, %c0_18] : memref<216x256xf32, #tpu.memory_space<vmem>>, vector<8x256xf32>
    tpu.vector_store %arg14[%c0_17, %c0_18], %45 {strides = array<i32>} : memref<216x256xf32, #tpu.memory_space<vmem>>, vector<8x256xf32>,
    %c16_i32 = arith.constant 16 : i32
    %47 = tpu.dynamic_rotate %34 by %c16_i32 dim 1 : vector<8x256xf32>, i32 -> vector<8x256xf32>
    %cst_19 = arith.constant 0.000000e+00 : f32
    %48 = vector.shape_cast %11 : vector<1x256xi1> to vector<1x256xi1>
    %49 = vector.broadcast %48 : vector<1x256xi1> to vector<8x256xi1>
    %50 = vector.broadcast %cst_19 : f32 to vector<8x256xf32>
    %51 = arith.select %49, %47, %50 : vector<8x256xi1>, vector<8x256xf32>
    %c8 = arith.constant 8 : index
    %c0_20 = arith.constant 0 : index
    %52 = vector.load %arg14[%c8, %c0_20] : memref<216x256xf32, #tpu.memory_space<vmem>>, vector<8x256xf32>
    tpu.vector_store %arg14[%c8, %c0_20], %51 {strides = array<i32>} : memref<216x256xf32, #tpu.memory_space<vmem>>, vector<8x256xf32>,
    %c15_i32_21 = arith.constant 15 : i32
    %53 = tpu.dynamic_rotate %34 by %c15_i32_21 dim 1 : vector<8x256xf32>, i32 -> vector<8x256xf32>
    %cst_22 = arith.constant 0.000000e+00 : f32
    %54 = vector.shape_cast %16 : vector<1x256xi1> to vector<1x256xi1>
    %55 = vector.broadcast %54 : vector<1x256xi1> to vector<8x256xi1>
    %56 = vector.broadcast %cst_22 : f32 to vector<8x256xf32>
    %57 = arith.select %55, %53, %56 : vector<8x256xi1>, vector<8x256xf32>
    %c16 = arith.constant 16 : index
    %c0_23 = arith.constant 0 : index
    %58 = vector.load %arg14[%c16, %c0_23] : memref<216x256xf32, #tpu.memory_space<vmem>>, vector<8x256xf32>
    tpu.vector_store %arg14[%c16, %c0_23], %57 {strides = array<i32>} : memref<216x256xf32, #tpu.memory_space<vmem>>, vector<8x256xf32>,
    %c1_i32_24 = arith.constant 1 : i32
    %59 = tpu.dynamic_rotate %34 by %c1_i32_24 dim 1 : vector<8x256xf32>, i32 -> vector<8x256xf32>
    %cst_25 = arith.constant 0.000000e+00 : f32
    %60 = vector.shape_cast %18 : vector<1x256xi1> to vector<1x256xi1>
    %61 = vector.broadcast %60 : vector<1x256xi1> to vector<8x256xi1>
    %62 = vector.broadcast %cst_25 : f32 to vector<8x256xf32>
    %63 = arith.select %61, %59, %62 : vector<8x256xi1>, vector<8x256xf32>
    %c24 = arith.constant 24 : index
    %c0_26 = arith.constant 0 : index
    %64 = vector.load %arg14[%c24, %c0_26] : memref<216x256xf32, #tpu.memory_space<vmem>>, vector<8x256xf32>
    tpu.vector_store %arg14[%c24, %c0_26], %63 {strides = array<i32>} : memref<216x256xf32, #tpu.memory_space<vmem>>, vector<8x256xf32>,
    %c32 = arith.constant 32 : index
    %c0_27 = arith.constant 0 : index
    %65 = vector.load %arg14[%c32, %c0_27] : memref<216x256xf32, #tpu.memory_space<vmem>>, vector<8x256xf32>
    tpu.vector_store %arg14[%c32, %c0_27], %34 {strides = array<i32>} : memref<216x256xf32, #tpu.memory_space<vmem>>, vector<8x256xf32>,
    %c255_i32 = arith.constant 255 : i32
    %66 = tpu.dynamic_rotate %34 by %c255_i32 dim 1 : vector<8x256xf32>, i32 -> vector<8x256xf32>
    %cst_28 = arith.constant 0.000000e+00 : f32
    %67 = vector.shape_cast %20 : vector<1x256xi1> to vector<1x256xi1>
    %68 = vector.broadcast %67 : vector<1x256xi1> to vector<8x256xi1>
    %69 = vector.broadcast %cst_28 : f32 to vector<8x256xf32>
    %70 = arith.select %68, %66, %69 : vector<8x256xi1>, vector<8x256xf32>
    %c40 = arith.constant 40 : index
    %c0_29 = arith.constant 0 : index
    %71 = vector.load %arg14[%c40, %c0_29] : memref<216x256xf32, #tpu.memory_space<vmem>>, vector<8x256xf32>
    tpu.vector_store %arg14[%c40, %c0_29], %70 {strides = array<i32>} : memref<216x256xf32, #tpu.memory_space<vmem>>, vector<8x256xf32>,
    %c241_i32 = arith.constant 241 : i32
    %72 = tpu.dynamic_rotate %34 by %c241_i32 dim 1 : vector<8x256xf32>, i32 -> vector<8x256xf32>
    %cst_30 = arith.constant 0.000000e+00 : f32
    %73 = vector.shape_cast %25 : vector<1x256xi1> to vector<1x256xi1>
    %74 = vector.broadcast %73 : vector<1x256xi1> to vector<8x256xi1>
    %75 = vector.broadcast %cst_30 : f32 to vector<8x256xf32>
    %76 = arith.select %74, %72, %75 : vector<8x256xi1>, vector<8x256xf32>
    %c48 = arith.constant 48 : index
    %c0_31 = arith.constant 0 : index
    %77 = vector.load %arg14[%c48, %c0_31] : memref<216x256xf32, #tpu.memory_space<vmem>>, vector<8x256xf32>
    tpu.vector_store %arg14[%c48, %c0_31], %76 {strides = array<i32>} : memref<216x256xf32, #tpu.memory_space<vmem>>, vector<8x256xf32>,
    %c240_i32 = arith.constant 240 : i32
    %78 = tpu.dynamic_rotate %34 by %c240_i32 dim 1 : vector<8x256xf32>, i32 -> vector<8x256xf32>
    %cst_32 = arith.constant 0.000000e+00 : f32
    %79 = vector.shape_cast %27 : vector<1x256xi1> to vector<1x256xi1>
    %80 = vector.broadcast %79 : vector<1x256xi1> to vector<8x256xi1>
    %81 = vector.broadcast %cst_32 : f32 to vector<8x256xf32>
    %82 = arith.select %80, %78, %81 : vector<8x256xi1>, vector<8x256xf32>
    %c56 = arith.constant 56 : index
    %c0_33 = arith.constant 0 : index
    %83 = vector.load %arg14[%c56, %c0_33] : memref<216x256xf32, #tpu.memory_space<vmem>>, vector<8x256xf32>
    tpu.vector_store %arg14[%c56, %c0_33], %82 {strides = array<i32>} : memref<216x256xf32, #tpu.memory_space<vmem>>, vector<8x256xf32>,
    %c239_i32 = arith.constant 239 : i32
    %84 = tpu.dynamic_rotate %34 by %c239_i32 dim 1 : vector<8x256xf32>, i32 -> vector<8x256xf32>
    %cst_34 = arith.constant 0.000000e+00 : f32
    %85 = vector.shape_cast %32 : vector<1x256xi1> to vector<1x256xi1>
    %86 = vector.broadcast %85 : vector<1x256xi1> to vector<8x256xi1>
    %87 = vector.broadcast %cst_34 : f32 to vector<8x256xf32>
    %88 = arith.select %86, %84, %87 : vector<8x256xi1>, vector<8x256xf32>
    %c64 = arith.constant 64 : index
    %c0_35 = arith.constant 0 : index
    %89 = vector.load %arg14[%c64, %c0_35] : memref<216x256xf32, #tpu.memory_space<vmem>>, vector<8x256xf32>
    tpu.vector_store %arg14[%c64, %c0_35], %88 {strides = array<i32>} : memref<216x256xf32, #tpu.memory_space<vmem>>, vector<8x256xf32>,
    %c0_36 = arith.constant 0 : index
    %c0_37 = arith.constant 0 : index
    %90 = vector.load %arg2[%c0_36, %c0_37] : memref<8x72xf32, #tpu.memory_space<vmem>>, vector<8x72xf32>
    %c0_38 = arith.constant 0 : index
    %c0_39 = arith.constant 0 : index
    %91 = vector.load %arg14[%c0_38, %c0_39] : memref<216x256xf32, #tpu.memory_space<vmem>>, vector<72x256xf32>
    %cst_40 = arith.constant dense<0.000000e+00> : vector<8x256xf32>
    %92 = tpu.matmul %90, %91, %cst_40 {dimension_numbers = #tpu.dot_dimension_numbers<[1], [0], [0], [1], [0, 0, 1, 1], [], []>} : vector<8x72xf32>, vector<72x256xf32>, vector<8x256xf32> -> vector<8x256xf32>
    %c0_41 = arith.constant 0 : index
    %c0_42 = arith.constant 0 : index
    %93 = vector.load %arg3[%c0_41, %c0_42] : memref<8x1xf32, #tpu.memory_space<vmem>>, vector<8x1xf32>
    %94 = vector.broadcast %93 : vector<8x1xf32> to vector<8x256xf32>
    %95 = arith.addf %92, %94 : vector<8x256xf32>
    %cst_43 = arith.constant 0.000000e+00 : f32
    %96 = vector.broadcast %cst_43 : f32 to vector<8x256xf32>
    %97 = arith.maximumf %95, %96 : vector<8x256xf32>
    %c0_44 = arith.constant 0 : index
    %c0_45 = arith.constant 0 : index
    %98 = vector.load %arg9[%c0_44, %c0_45] : memref<8x8xf32, #tpu.memory_space<vmem>>, vector<8x8xf32>
    %cst_46 = arith.constant dense<0.000000e+00> : vector<8x256xf32>
    %99 = tpu.matmul %98, %97, %cst_46 {dimension_numbers = #tpu.dot_dimension_numbers<[1], [0], [0], [1], [0, 0, 1, 1], [], []>} : vector<8x8xf32>, vector<8x256xf32>, vector<8x256xf32> -> vector<8x256xf32>
    %100 = arith.addf %40, %99 : vector<8x256xf32>
    %c17_i32_47 = arith.constant 17 : i32
    %101 = tpu.dynamic_rotate %97 by %c17_i32_47 dim 1 : vector<8x256xf32>, i32 -> vector<8x256xf32>
    %cst_48 = arith.constant 0.000000e+00 : f32
    %102 = vector.shape_cast %9 : vector<1x256xi1> to vector<1x256xi1>
    %103 = vector.broadcast %102 : vector<1x256xi1> to vector<8x256xi1>
    %104 = vector.broadcast %cst_48 : f32 to vector<8x256xf32>
    %105 = arith.select %103, %101, %104 : vector<8x256xi1>, vector<8x256xf32>
    %c72 = arith.constant 72 : index
    %c0_49 = arith.constant 0 : index
    %106 = vector.load %arg14[%c72, %c0_49] : memref<216x256xf32, #tpu.memory_space<vmem>>, vector<8x256xf32>
    tpu.vector_store %arg14[%c72, %c0_49], %105 {strides = array<i32>} : memref<216x256xf32, #tpu.memory_space<vmem>>, vector<8x256xf32>,
    %c16_i32_50 = arith.constant 16 : i32
    %107 = tpu.dynamic_rotate %97 by %c16_i32_50 dim 1 : vector<8x256xf32>, i32 -> vector<8x256xf32>
    %cst_51 = arith.constant 0.000000e+00 : f32
    %108 = vector.shape_cast %11 : vector<1x256xi1> to vector<1x256xi1>
    %109 = vector.broadcast %108 : vector<1x256xi1> to vector<8x256xi1>
    %110 = vector.broadcast %cst_51 : f32 to vector<8x256xf32>
    %111 = arith.select %109, %107, %110 : vector<8x256xi1>, vector<8x256xf32>
    %c80 = arith.constant 80 : index
    %c0_52 = arith.constant 0 : index
    %112 = vector.load %arg14[%c80, %c0_52] : memref<216x256xf32, #tpu.memory_space<vmem>>, vector<8x256xf32>
    tpu.vector_store %arg14[%c80, %c0_52], %111 {strides = array<i32>} : memref<216x256xf32, #tpu.memory_space<vmem>>, vector<8x256xf32>,
    %c15_i32_53 = arith.constant 15 : i32
    %113 = tpu.dynamic_rotate %97 by %c15_i32_53 dim 1 : vector<8x256xf32>, i32 -> vector<8x256xf32>
    %cst_54 = arith.constant 0.000000e+00 : f32
    %114 = vector.shape_cast %16 : vector<1x256xi1> to vector<1x256xi1>
    %115 = vector.broadcast %114 : vector<1x256xi1> to vector<8x256xi1>
    %116 = vector.broadcast %cst_54 : f32 to vector<8x256xf32>
    %117 = arith.select %115, %113, %116 : vector<8x256xi1>, vector<8x256xf32>
    %c88 = arith.constant 88 : index
    %c0_55 = arith.constant 0 : index
    %118 = vector.load %arg14[%c88, %c0_55] : memref<216x256xf32, #tpu.memory_space<vmem>>, vector<8x256xf32>
    tpu.vector_store %arg14[%c88, %c0_55], %117 {strides = array<i32>} : memref<216x256xf32, #tpu.memory_space<vmem>>, vector<8x256xf32>,
    %c1_i32_56 = arith.constant 1 : i32
    %119 = tpu.dynamic_rotate %97 by %c1_i32_56 dim 1 : vector<8x256xf32>, i32 -> vector<8x256xf32>
    %cst_57 = arith.constant 0.000000e+00 : f32
    %120 = vector.shape_cast %18 : vector<1x256xi1> to vector<1x256xi1>
    %121 = vector.broadcast %120 : vector<1x256xi1> to vector<8x256xi1>
    %122 = vector.broadcast %cst_57 : f32 to vector<8x256xf32>
    %123 = arith.select %121, %119, %122 : vector<8x256xi1>, vector<8x256xf32>
    %c96 = arith.constant 96 : index
    %c0_58 = arith.constant 0 : index
    %124 = vector.load %arg14[%c96, %c0_58] : memref<216x256xf32, #tpu.memory_space<vmem>>, vector<8x256xf32>
    tpu.vector_store %arg14[%c96, %c0_58], %123 {strides = array<i32>} : memref<216x256xf32, #tpu.memory_space<vmem>>, vector<8x256xf32>,
    %c104 = arith.constant 104 : index
    %c0_59 = arith.constant 0 : index
    %125 = vector.load %arg14[%c104, %c0_59] : memref<216x256xf32, #tpu.memory_space<vmem>>, vector<8x256xf32>
    tpu.vector_store %arg14[%c104, %c0_59], %97 {strides = array<i32>} : memref<216x256xf32, #tpu.memory_space<vmem>>, vector<8x256xf32>,
    %c255_i32_60 = arith.constant 255 : i32
    %126 = tpu.dynamic_rotate %97 by %c255_i32_60 dim 1 : vector<8x256xf32>, i32 -> vector<8x256xf32>
    %cst_61 = arith.constant 0.000000e+00 : f32
    %127 = vector.shape_cast %20 : vector<1x256xi1> to vector<1x256xi1>
    %128 = vector.broadcast %127 : vector<1x256xi1> to vector<8x256xi1>
    %129 = vector.broadcast %cst_61 : f32 to vector<8x256xf32>
    %130 = arith.select %128, %126, %129 : vector<8x256xi1>, vector<8x256xf32>
    %c112 = arith.constant 112 : index
    %c0_62 = arith.constant 0 : index
    %131 = vector.load %arg14[%c112, %c0_62] : memref<216x256xf32, #tpu.memory_space<vmem>>, vector<8x256xf32>
    tpu.vector_store %arg14[%c112, %c0_62], %130 {strides = array<i32>} : memref<216x256xf32, #tpu.memory_space<vmem>>, vector<8x256xf32>,
    %c241_i32_63 = arith.constant 241 : i32
    %132 = tpu.dynamic_rotate %97 by %c241_i32_63 dim 1 : vector<8x256xf32>, i32 -> vector<8x256xf32>
    %cst_64 = arith.constant 0.000000e+00 : f32
    %133 = vector.shape_cast %25 : vector<1x256xi1> to vector<1x256xi1>
    %134 = vector.broadcast %133 : vector<1x256xi1> to vector<8x256xi1>
    %135 = vector.broadcast %cst_64 : f32 to vector<8x256xf32>
    %136 = arith.select %134, %132, %135 : vector<8x256xi1>, vector<8x256xf32>
    %c120 = arith.constant 120 : index
    %c0_65 = arith.constant 0 : index
    %137 = vector.load %arg14[%c120, %c0_65] : memref<216x256xf32, #tpu.memory_space<vmem>>, vector<8x256xf32>
    tpu.vector_store %arg14[%c120, %c0_65], %136 {strides = array<i32>} : memref<216x256xf32, #tpu.memory_space<vmem>>, vector<8x256xf32>,
    %c240_i32_66 = arith.constant 240 : i32
    %138 = tpu.dynamic_rotate %97 by %c240_i32_66 dim 1 : vector<8x256xf32>, i32 -> vector<8x256xf32>
    %cst_67 = arith.constant 0.000000e+00 : f32
    %139 = vector.shape_cast %27 : vector<1x256xi1> to vector<1x256xi1>
    %140 = vector.broadcast %139 : vector<1x256xi1> to vector<8x256xi1>
    %141 = vector.broadcast %cst_67 : f32 to vector<8x256xf32>
    %142 = arith.select %140, %138, %141 : vector<8x256xi1>, vector<8x256xf32>
    %c128 = arith.constant 128 : index
    %c0_68 = arith.constant 0 : index
    %143 = vector.load %arg14[%c128, %c0_68] : memref<216x256xf32, #tpu.memory_space<vmem>>, vector<8x256xf32>
    tpu.vector_store %arg14[%c128, %c0_68], %142 {strides = array<i32>} : memref<216x256xf32, #tpu.memory_space<vmem>>, vector<8x256xf32>,
    %c239_i32_69 = arith.constant 239 : i32
    %144 = tpu.dynamic_rotate %97 by %c239_i32_69 dim 1 : vector<8x256xf32>, i32 -> vector<8x256xf32>
    %cst_70 = arith.constant 0.000000e+00 : f32
    %145 = vector.shape_cast %32 : vector<1x256xi1> to vector<1x256xi1>
    %146 = vector.broadcast %145 : vector<1x256xi1> to vector<8x256xi1>
    %147 = vector.broadcast %cst_70 : f32 to vector<8x256xf32>
    %148 = arith.select %146, %144, %147 : vector<8x256xi1>, vector<8x256xf32>
    %c136 = arith.constant 136 : index
    %c0_71 = arith.constant 0 : index
    %149 = vector.load %arg14[%c136, %c0_71] : memref<216x256xf32, #tpu.memory_space<vmem>>, vector<8x256xf32>
    tpu.vector_store %arg14[%c136, %c0_71], %148 {strides = array<i32>} : memref<216x256xf32, #tpu.memory_space<vmem>>, vector<8x256xf32>,
    %c0_72 = arith.constant 0 : index
    %c0_73 = arith.constant 0 : index
    %150 = vector.load %arg4[%c0_72, %c0_73] : memref<8x144xf32, #tpu.memory_space<vmem>>, vector<8x144xf32>
    %c0_74 = arith.constant 0 : index
    %c0_75 = arith.constant 0 : index
    %151 = vector.load %arg14[%c0_74, %c0_75] : memref<216x256xf32, #tpu.memory_space<vmem>>, vector<144x256xf32>
    %cst_76 = arith.constant dense<0.000000e+00> : vector<8x256xf32>
    %152 = tpu.matmul %150, %151, %cst_76 {dimension_numbers = #tpu.dot_dimension_numbers<[1], [0], [0], [1], [0, 0, 1, 1], [], []>} : vector<8x144xf32>, vector<144x256xf32>, vector<8x256xf32> -> vector<8x256xf32>
    %c0_77 = arith.constant 0 : index
    %c0_78 = arith.constant 0 : index
    %153 = vector.load %arg5[%c0_77, %c0_78] : memref<8x1xf32, #tpu.memory_space<vmem>>, vector<8x1xf32>
    %154 = vector.broadcast %153 : vector<8x1xf32> to vector<8x256xf32>
    %155 = arith.addf %152, %154 : vector<8x256xf32>
    %cst_79 = arith.constant 0.000000e+00 : f32
    %156 = vector.broadcast %cst_79 : f32 to vector<8x256xf32>
    %157 = arith.maximumf %155, %156 : vector<8x256xf32>
    %c0_80 = arith.constant 0 : index
    %c0_81 = arith.constant 0 : index
    %158 = vector.load %arg10[%c0_80, %c0_81] : memref<8x8xf32, #tpu.memory_space<vmem>>, vector<8x8xf32>
    %cst_82 = arith.constant dense<0.000000e+00> : vector<8x256xf32>
    %159 = tpu.matmul %158, %157, %cst_82 {dimension_numbers = #tpu.dot_dimension_numbers<[1], [0], [0], [1], [0, 0, 1, 1], [], []>} : vector<8x8xf32>, vector<8x256xf32>, vector<8x256xf32> -> vector<8x256xf32>
    %160 = arith.addf %100, %159 : vector<8x256xf32>
    %c17_i32_83 = arith.constant 17 : i32
    %161 = tpu.dynamic_rotate %157 by %c17_i32_83 dim 1 : vector<8x256xf32>, i32 -> vector<8x256xf32>
    %cst_84 = arith.constant 0.000000e+00 : f32
    %162 = vector.shape_cast %9 : vector<1x256xi1> to vector<1x256xi1>
    %163 = vector.broadcast %162 : vector<1x256xi1> to vector<8x256xi1>
    %164 = vector.broadcast %cst_84 : f32 to vector<8x256xf32>
    %165 = arith.select %163, %161, %164 : vector<8x256xi1>, vector<8x256xf32>
    %c144 = arith.constant 144 : index
    %c0_85 = arith.constant 0 : index
    %166 = vector.load %arg14[%c144, %c0_85] : memref<216x256xf32, #tpu.memory_space<vmem>>, vector<8x256xf32>
    tpu.vector_store %arg14[%c144, %c0_85], %165 {strides = array<i32>} : memref<216x256xf32, #tpu.memory_space<vmem>>, vector<8x256xf32>,
    %c16_i32_86 = arith.constant 16 : i32
    %167 = tpu.dynamic_rotate %157 by %c16_i32_86 dim 1 : vector<8x256xf32>, i32 -> vector<8x256xf32>
    %cst_87 = arith.constant 0.000000e+00 : f32
    %168 = vector.shape_cast %11 : vector<1x256xi1> to vector<1x256xi1>
    %169 = vector.broadcast %168 : vector<1x256xi1> to vector<8x256xi1>
    %170 = vector.broadcast %cst_87 : f32 to vector<8x256xf32>
    %171 = arith.select %169, %167, %170 : vector<8x256xi1>, vector<8x256xf32>
    %c152 = arith.constant 152 : index
    %c0_88 = arith.constant 0 : index
    %172 = vector.load %arg14[%c152, %c0_88] : memref<216x256xf32, #tpu.memory_space<vmem>>, vector<8x256xf32>
    tpu.vector_store %arg14[%c152, %c0_88], %171 {strides = array<i32>} : memref<216x256xf32, #tpu.memory_space<vmem>>, vector<8x256xf32>,
    %c15_i32_89 = arith.constant 15 : i32
    %173 = tpu.dynamic_rotate %157 by %c15_i32_89 dim 1 : vector<8x256xf32>, i32 -> vector<8x256xf32>
    %cst_90 = arith.constant 0.000000e+00 : f32
    %174 = vector.shape_cast %16 : vector<1x256xi1> to vector<1x256xi1>
    %175 = vector.broadcast %174 : vector<1x256xi1> to vector<8x256xi1>
    %176 = vector.broadcast %cst_90 : f32 to vector<8x256xf32>
    %177 = arith.select %175, %173, %176 : vector<8x256xi1>, vector<8x256xf32>
    %c160 = arith.constant 160 : index
    %c0_91 = arith.constant 0 : index
    %178 = vector.load %arg14[%c160, %c0_91] : memref<216x256xf32, #tpu.memory_space<vmem>>, vector<8x256xf32>
    tpu.vector_store %arg14[%c160, %c0_91], %177 {strides = array<i32>} : memref<216x256xf32, #tpu.memory_space<vmem>>, vector<8x256xf32>,
    %c1_i32_92 = arith.constant 1 : i32
    %179 = tpu.dynamic_rotate %157 by %c1_i32_92 dim 1 : vector<8x256xf32>, i32 -> vector<8x256xf32>
    %cst_93 = arith.constant 0.000000e+00 : f32
    %180 = vector.shape_cast %18 : vector<1x256xi1> to vector<1x256xi1>
    %181 = vector.broadcast %180 : vector<1x256xi1> to vector<8x256xi1>
    %182 = vector.broadcast %cst_93 : f32 to vector<8x256xf32>
    %183 = arith.select %181, %179, %182 : vector<8x256xi1>, vector<8x256xf32>
    %c168 = arith.constant 168 : index
    %c0_94 = arith.constant 0 : index
    %184 = vector.load %arg14[%c168, %c0_94] : memref<216x256xf32, #tpu.memory_space<vmem>>, vector<8x256xf32>
    tpu.vector_store %arg14[%c168, %c0_94], %183 {strides = array<i32>} : memref<216x256xf32, #tpu.memory_space<vmem>>, vector<8x256xf32>,
    %c176 = arith.constant 176 : index
    %c0_95 = arith.constant 0 : index
    %185 = vector.load %arg14[%c176, %c0_95] : memref<216x256xf32, #tpu.memory_space<vmem>>, vector<8x256xf32>
    tpu.vector_store %arg14[%c176, %c0_95], %157 {strides = array<i32>} : memref<216x256xf32, #tpu.memory_space<vmem>>, vector<8x256xf32>,
    %c255_i32_96 = arith.constant 255 : i32
    %186 = tpu.dynamic_rotate %157 by %c255_i32_96 dim 1 : vector<8x256xf32>, i32 -> vector<8x256xf32>
    %cst_97 = arith.constant 0.000000e+00 : f32
    %187 = vector.shape_cast %20 : vector<1x256xi1> to vector<1x256xi1>
    %188 = vector.broadcast %187 : vector<1x256xi1> to vector<8x256xi1>
    %189 = vector.broadcast %cst_97 : f32 to vector<8x256xf32>
    %190 = arith.select %188, %186, %189 : vector<8x256xi1>, vector<8x256xf32>
    %c184 = arith.constant 184 : index
    %c0_98 = arith.constant 0 : index
    %191 = vector.load %arg14[%c184, %c0_98] : memref<216x256xf32, #tpu.memory_space<vmem>>, vector<8x256xf32>
    tpu.vector_store %arg14[%c184, %c0_98], %190 {strides = array<i32>} : memref<216x256xf32, #tpu.memory_space<vmem>>, vector<8x256xf32>,
    %c241_i32_99 = arith.constant 241 : i32
    %192 = tpu.dynamic_rotate %157 by %c241_i32_99 dim 1 : vector<8x256xf32>, i32 -> vector<8x256xf32>
    %cst_100 = arith.constant 0.000000e+00 : f32
    %193 = vector.shape_cast %25 : vector<1x256xi1> to vector<1x256xi1>
    %194 = vector.broadcast %193 : vector<1x256xi1> to vector<8x256xi1>
    %195 = vector.broadcast %cst_100 : f32 to vector<8x256xf32>
    %196 = arith.select %194, %192, %195 : vector<8x256xi1>, vector<8x256xf32>
    %c192 = arith.constant 192 : index
    %c0_101 = arith.constant 0 : index
    %197 = vector.load %arg14[%c192, %c0_101] : memref<216x256xf32, #tpu.memory_space<vmem>>, vector<8x256xf32>
    tpu.vector_store %arg14[%c192, %c0_101], %196 {strides = array<i32>} : memref<216x256xf32, #tpu.memory_space<vmem>>, vector<8x256xf32>,
    %c240_i32_102 = arith.constant 240 : i32
    %198 = tpu.dynamic_rotate %157 by %c240_i32_102 dim 1 : vector<8x256xf32>, i32 -> vector<8x256xf32>
    %cst_103 = arith.constant 0.000000e+00 : f32
    %199 = vector.shape_cast %27 : vector<1x256xi1> to vector<1x256xi1>
    %200 = vector.broadcast %199 : vector<1x256xi1> to vector<8x256xi1>
    %201 = vector.broadcast %cst_103 : f32 to vector<8x256xf32>
    %202 = arith.select %200, %198, %201 : vector<8x256xi1>, vector<8x256xf32>
    %c200 = arith.constant 200 : index
    %c0_104 = arith.constant 0 : index
    %203 = vector.load %arg14[%c200, %c0_104] : memref<216x256xf32, #tpu.memory_space<vmem>>, vector<8x256xf32>
    tpu.vector_store %arg14[%c200, %c0_104], %202 {strides = array<i32>} : memref<216x256xf32, #tpu.memory_space<vmem>>, vector<8x256xf32>,
    %c239_i32_105 = arith.constant 239 : i32
    %204 = tpu.dynamic_rotate %157 by %c239_i32_105 dim 1 : vector<8x256xf32>, i32 -> vector<8x256xf32>
    %cst_106 = arith.constant 0.000000e+00 : f32
    %205 = vector.shape_cast %32 : vector<1x256xi1> to vector<1x256xi1>
    %206 = vector.broadcast %205 : vector<1x256xi1> to vector<8x256xi1>
    %207 = vector.broadcast %cst_106 : f32 to vector<8x256xf32>
    %208 = arith.select %206, %204, %207 : vector<8x256xi1>, vector<8x256xf32>
    %c208 = arith.constant 208 : index
    %c0_107 = arith.constant 0 : index
    %209 = vector.load %arg14[%c208, %c0_107] : memref<216x256xf32, #tpu.memory_space<vmem>>, vector<8x256xf32>
    tpu.vector_store %arg14[%c208, %c0_107], %208 {strides = array<i32>} : memref<216x256xf32, #tpu.memory_space<vmem>>, vector<8x256xf32>,
    %c0_108 = arith.constant 0 : index
    %c0_109 = arith.constant 0 : index
    %210 = vector.load %arg6[%c0_108, %c0_109] : memref<8x216xf32, #tpu.memory_space<vmem>>, vector<8x216xf32>
    %c0_110 = arith.constant 0 : index
    %c0_111 = arith.constant 0 : index
    %211 = vector.load %arg14[%c0_110, %c0_111] : memref<216x256xf32, #tpu.memory_space<vmem>>, vector<216x256xf32>
    %cst_112 = arith.constant dense<0.000000e+00> : vector<8x256xf32>
    %212 = tpu.matmul %210, %211, %cst_112 {dimension_numbers = #tpu.dot_dimension_numbers<[1], [0], [0], [1], [0, 0, 1, 1], [], []>} : vector<8x216xf32>, vector<216x256xf32>, vector<8x256xf32> -> vector<8x256xf32>
    %c0_113 = arith.constant 0 : index
    %c0_114 = arith.constant 0 : index
    %213 = vector.load %arg7[%c0_113, %c0_114] : memref<8x1xf32, #tpu.memory_space<vmem>>, vector<8x1xf32>
    %214 = vector.broadcast %213 : vector<8x1xf32> to vector<8x256xf32>
    %215 = arith.addf %212, %214 : vector<8x256xf32>
    %cst_115 = arith.constant 0.000000e+00 : f32
    %216 = vector.broadcast %cst_115 : f32 to vector<8x256xf32>
    %217 = arith.maximumf %215, %216 : vector<8x256xf32>
    %c0_116 = arith.constant 0 : index
    %c0_117 = arith.constant 0 : index
    %218 = vector.load %arg11[%c0_116, %c0_117] : memref<8x8xf32, #tpu.memory_space<vmem>>, vector<8x8xf32>
    %cst_118 = arith.constant dense<0.000000e+00> : vector<8x256xf32>
    %219 = tpu.matmul %218, %217, %cst_118 {dimension_numbers = #tpu.dot_dimension_numbers<[1], [0], [0], [1], [0, 0, 1, 1], [], []>} : vector<8x8xf32>, vector<8x256xf32>, vector<8x256xf32> -> vector<8x256xf32>
    %220 = arith.addf %160, %219 : vector<8x256xf32>
    %c0_119 = arith.constant 0 : index
    %c0_120 = arith.constant 0 : index
    %c0_121 = arith.constant 0 : index
    %221 = vector.load %arg13[%c0_119, %c0_120, %c0_121] : memref<1x8x256xf32, #tpu.memory_space<vmem>>, vector<1x8x256xf32>
    %222 = vector.shape_cast %221 : vector<1x8x256xf32> to vector<8x256xf32>
    %223 = vector.shape_cast %220 : vector<8x256xf32> to vector<1x8x256xf32>
    tpu.vector_store %arg13[%c0_119, %c0_120, %c0_121], %223 {strides = array<i32>} : memref<1x8x256xf32, #tpu.memory_space<vmem>>, vector<1x8x256xf32>,
    return
  }
  func.func @transform_0(%arg0: i32) -> (i32, i32, i32) {
    %c0_i32 = arith.constant 0 : i32
    %c0_i32_0 = arith.constant 0 : i32
    %c0_i32_1 = arith.constant 0 : i32
    return %arg0, %c0_i32, %c0_i32_0 : i32, i32, i32
  }
  func.func @transform_1(%arg0: i32) -> (i32, i32) {
    %c0_i32 = arith.constant 0 : i32
    %c0_i32_0 = arith.constant 0 : i32
    %c0_i32_1 = arith.constant 0 : i32
    return %c0_i32, %c0_i32_0 : i32, i32
  }
  func.func @transform_2(%arg0: i32) -> (i32, i32) {
    %c0_i32 = arith.constant 0 : i32
    %c0_i32_0 = arith.constant 0 : i32
    %c0_i32_1 = arith.constant 0 : i32
    return %c0_i32, %c0_i32_0 : i32, i32
  }
  func.func @transform_3(%arg0: i32) -> (i32, i32) {
    %c0_i32 = arith.constant 0 : i32
    %c0_i32_0 = arith.constant 0 : i32
    %c0_i32_1 = arith.constant 0 : i32
    return %c0_i32, %c0_i32_0 : i32, i32
  }
  func.func @transform_4(%arg0: i32) -> (i32, i32) {
    %c0_i32 = arith.constant 0 : i32
    %c0_i32_0 = arith.constant 0 : i32
    %c0_i32_1 = arith.constant 0 : i32
    return %c0_i32, %c0_i32_0 : i32, i32
  }
  func.func @transform_5(%arg0: i32) -> (i32, i32) {
    %c0_i32 = arith.constant 0 : i32
    %c0_i32_0 = arith.constant 0 : i32
    %c0_i32_1 = arith.constant 0 : i32
    return %c0_i32, %c0_i32_0 : i32, i32
  }
  func.func @transform_6(%arg0: i32) -> (i32, i32) {
    %c0_i32 = arith.constant 0 : i32
    %c0_i32_0 = arith.constant 0 : i32
    %c0_i32_1 = arith.constant 0 : i32
    return %c0_i32, %c0_i32_0 : i32, i32
  }
  func.func @transform_7(%arg0: i32) -> (i32, i32) {
    %c0_i32 = arith.constant 0 : i32
    %c0_i32_0 = arith.constant 0 : i32
    %c0_i32_1 = arith.constant 0 : i32
    return %c0_i32, %c0_i32_0 : i32, i32
  }
  func.func @transform_8(%arg0: i32) -> (i32, i32) {
    %c0_i32 = arith.constant 0 : i32
    %c0_i32_0 = arith.constant 0 : i32
    %c0_i32_1 = arith.constant 0 : i32
    return %c0_i32, %c0_i32_0 : i32, i32
  }
  func.func @transform_9(%arg0: i32) -> (i32, i32) {
    %c0_i32 = arith.constant 0 : i32
    %c0_i32_0 = arith.constant 0 : i32
    %c0_i32_1 = arith.constant 0 : i32
    return %c0_i32, %c0_i32_0 : i32, i32
  }
  func.func @transform_10(%arg0: i32) -> (i32, i32) {
    %c0_i32 = arith.constant 0 : i32
    %c0_i32_0 = arith.constant 0 : i32
    %c0_i32_1 = arith.constant 0 : i32
    return %c0_i32, %c0_i32_0 : i32, i32
  }
  func.func @transform_11(%arg0: i32) -> (i32, i32) {
    %c0_i32 = arith.constant 0 : i32
    %c0_i32_0 = arith.constant 0 : i32
    %c0_i32_1 = arith.constant 0 : i32
    return %c0_i32, %c0_i32_0 : i32, i32
  }
  func.func @transform_12(%arg0: i32) -> (i32, i32, i32) {
    %c0_i32 = arith.constant 0 : i32
    %c0_i32_0 = arith.constant 0 : i32
    %c0_i32_1 = arith.constant 0 : i32
    return %arg0, %c0_i32, %c0_i32_0 : i32, i32, i32
  }
}

</mosaic_0001>

<bundles_post_ra>
// kernel: tpu_custom_call.1
= control target key start
LH: loop header
LB: loop body
LE: loop exit
PB: predicated region body
PF: predicated region fallthrough
CT: control target
= control target key end

     0   :  { %17 = vsyncpa [#allocation4], 0  ;;  %s3100_s0 = inlined_call_operand.vmem [shape: f32[2,8,256], index: 0, kind: input, shape index: {}]   ;;  %s3101_s1 = inlined_call_operand.hbm [shape: f32[8,72], index: 1, kind: input, shape index: {}]   ;;  %s3102_s2 = inlined_call_operand.vmem [shape: f32[8,1], index: 2, kind: input, shape index: {}]   ;;  %s3103_s3 = inlined_call_operand.hbm [shape: f32[8,144], index: 3, kind: input, shape index: {}]   ;;  %s3104_s4 = inlined_call_operand.vmem [shape: f32[8,1], index: 4, kind: input, shape index: {}]   ;;  %s3105_s5 = inlined_call_operand.vmem [shape: f32[8,216], index: 5, kind: input, shape index: {}]   ;;  %s3106_s6 = inlined_call_operand.vmem [shape: f32[8,1], index: 6, kind: input, shape index: {}]   ;;  %s3107_s7 = inlined_call_operand.vmem [shape: f32[8,8], index: 7, kind: input, shape index: {}]   ;;  %s3108_s8 = inlined_call_operand.vmem [shape: f32[8,8], index: 8, kind: input, shape index: {}]   ;;  %s3109_s9 = inlined_call_operand.hbm [shape: f32[8,8], index: 9, kind: input, shape index: {}]   ;;  %s3110_s10 = inlined_call_operand.vmem [shape: f32[8,8], index: 10, kind: input, shape index: {}]   ;;  %s3111_s11 = inlined_call_operand.vmem [shape: f32[8,1], index: 11, kind: input, shape index: {}]   ;;  %s3112_s12 = inlined_call_operand.hbm [shape: f32[2,8,256], index: 12, kind: output, shape index: {}]  }
   0x1   :  { %18 = vsyncpa [#allocation7], 0 }
   0x2   :  { %19 = vsyncpa [#allocation5], 0 }
   0x3   :  { %21 = vsyncpa [#allocation5 + $0x1], 0  ;;  %s2263_s21 = smov 0   ;;  %s2265_s22 = smov 0  }
   0x4   :  { %s2267_s23 = smov 0   ;;  %s2269_s24 = smov 0  }
   0x5 LB: > { %3167 = sst [smem:[#allocation13_spill]] %s2169_s21  ;;  %s2284_s25 = sadd.s32 4294967295, %s2181_s24   ;;  %s2181_s24 = sphi %s2269_s24, %s3305_s24   ;;  %s2177_s23 = sphi %s2267_s23, %s3307_s23   ;;  %s2173_s22 = sphi %s2265_s22, %s3309_s22   ;;  %s2169_s21 = sphi %s2263_s21, %s3308_s21  }
   0x6   : > { %3168 = sst [smem:[#allocation14_spill]] %s2177_s23  ;;  %s1547_s26 = sadd.s32 4294967294, %s2181_s24  }
   0x7   : > { %3169 = sst [smem:[#allocation15_spill]] %s2181_s24  ;;  %s2288_s27 = sadd.s32 1, %s2181_s24  }
   0x8   : > { %3170 = sst [smem:[#allocation16_spill]] %s2288_s27  ;;  %s291_s28 = sadd.s32 1, %s2177_s23 }
   0x9   : > { %s288_s29 = ssub.s32 %s2181_s24, %s2288_s27  ;;  %p301_p0 = scmp.ne.s32.totalorder %s2177_s23, %s2173_s22 }
   0xa   : > { %p289_p1 = scmp.eq.s32.totalorder %s288_s29, 0  ;;  %p302_p2 = scmp.eq.s32.totalorder %s2284_s25, 1 }
   0xb   : > { %p307_p3 = scmp.ne.s32.totalorder %s2173_s22, %s2169_s21  ;;  %p308_p4 = scmp.eq.s32.totalorder %s1547_s26, 1 }
   0xc   : > { %s2299_s30 = scalar_select %p289_p1, %s2177_s23, %s291_s28  }
   0xd   : > { %p2301_p5 = por %p302_p2, %p301_p0  ;;  %p2305_p6 = por %p308_p4, %p307_p3 }
   0xe   : > { %3171 = sst [smem:[#allocation17_spill]] %s2299_s30  ;;  %p1548_p7 = scmp.ge.s32.totalorder %s2181_s24, 1 }
   0xf   : > { %s3172_s13 = scalar_select %p2301_p5, 1, 0 }
  0x10   : > { %s3173_s14 = scalar_select %p2305_p6, 1, 0 }
  0x11   : > { %p315_p8 = scmp.lt.s32.totalorder %s2181_s24, 3  ;;  %p3117_p9 = scmp.eq.s32.totalorder %s2284_s25, 0 }
  0x12   : > { %3174 = sst [smem:[#allocation18_spill]] %s3173_s14  ;;  %s2183_s16 = smov [#allocation6]  }
  0x13   : > { %p2312_p10 = pnand %p1548_p7, %p315_p8  ;;  %s342_s17 = sshll.u32 %s2183_s16, 4  ;;  %s343_s17 = int_to_ptr.vmem [resolvable:$true] %s342_s17 }
  0x14   : > { %s2184_s18 = smov [#allocation3]   ;;  %s2185_s26 = smov [#allocation8]  }
  0x15   : > { %s3175_s15 = scalar_select %p2312_p10, 1, 0 }
  0x16   : > { %p1848_p11 = pneg %p2312_p10  ;;  %s328_s19 = sshll.u32 %s2184_s18, 4  ;;  %s2324_s19 = int_to_ptr.vmem [resolvable:$true] %s328_s19 }
  0x17   : > { %s368_s28 = sshll.u32 %s2185_s26, 4  ;;  %s2027_s16 = scalar_lea.hbm %s3103_s3, 256  ;;  %s2326_s28 = int_to_ptr.vmem [resolvable:$true] %s368_s28 }
  0x18   : > { %p2320_p12 = pnand %p3117_p9, %p1848_p11  ;;  %p2028_p13 = scmp.ne.s32.totalorder %s3103_s3, %s2027_s16 }
  0x19   : > { %p2034_p3 = scmp.lt.u32.totalorder %s2027_s16, %s3103_s3 }
  0x1a   : > { %p2336_p0 = pneg %p2320_p12 }
  0x1c   : > { %p2030_p1 = pnand %p2336_p0, %p2028_p13 }
  0x1e   : > { %p2031_p2 = pneg %p2030_p1 }
  0x20   : > { %p2036_p4 = pnand %p2034_p3, %p2031_p2 }
  0x22   : > { %2039 = shalt.err (!%p2036_p4)
}
  0x23   : > { %s2040_s30 = scalar_lea.vmem %s343_s17, 256  ;;  %p2048_p9 = scmp.lt.s32.totalorder %s343_s17, %s343_s17 }
  0x24   : > { %p2041_p7 = scmp.ne.s32.totalorder %s343_s17, %s2040_s30  ;;  %p2049_p6 = scmp.lt.s32.totalorder %s2040_s30, %s2040_s30 }
  0x26   : > { %p2043_p8 = pnand %p2041_p7, %p2336_p0  ;;  %p2050_p5 = por %p2049_p6, %p2048_p9 }
  0x28   : > { %p2044_p11 = pneg %p2043_p8 }
  0x2a   : > { %p2051_p10 = pnand %p2050_p5, %p2044_p11 }
  0x2c   : > { %2054 = shalt.err (!%p2051_p10)
}
  0x2d   : > { %1854 = dma.hbm_to_vmem [thread:$0]  (!%p2320_p12), %s3103_s3, 256, %s343_s17, [#allocation7]  }
  0x2e   : > { %s2055_s16 = scalar_lea.hbm %s3101_s1, 128 }
  0x2f   : > { %p2056_p13 = scmp.ne.s32.totalorder %s3101_s1, %s2055_s16  ;;  %p2062_p5 = scmp.lt.u32.totalorder %s2055_s16, %s3101_s1 }
  0x31   : > { %p2058_p1 = pnand %p2056_p13, %p2336_p0 }
  0x33   : > { %p2059_p6 = pneg %p2058_p1 }
  0x35   : > { %p2064_p9 = pnand %p2062_p5, %p2059_p6 }
  0x37   : > { %2067 = shalt.err (!%p2064_p9)
}
  0x38   : > { %s2068_s17 = scalar_lea.vmem %s2324_s19, 128  ;;  %p2076_p4 = scmp.lt.s32.totalorder %s2324_s19, %s2324_s19 }
  0x39   : > { %p2069_p10 = scmp.ne.s32.totalorder %s2324_s19, %s2068_s17  ;;  %p2077_p7 = scmp.lt.s32.totalorder %s2068_s17, %s2068_s17 }
  0x3b   : > { %p2071_p2 = pnand %p2069_p10, %p2336_p0  ;;  %p2078_p8 = por %p2077_p7, %p2076_p4 }
  0x3d   : > { %p2072_p3 = pneg %p2071_p2 }
  0x3f   : > { %p2079_p11 = pnand %p2078_p8, %p2072_p3 }
  0x41   : > { %2082 = shalt.err (!%p2079_p11)
}
  0x42   : > { %1851 = dma.hbm_to_vmem [thread:$0]  (!%p2320_p12), %s3101_s1, 128, %s2324_s19, [#allocation4]  }
  0x43   : > { %s2083_s14 = scalar_lea.hbm %s3109_s9, 128 }
  0x44   : > { %p2084_p13 = scmp.ne.s32.totalorder %s3109_s9, %s2083_s14  ;;  %p2090_p5 = scmp.lt.u32.totalorder %s2083_s14, %s3109_s9 }
  0x46   : > { %p2086_p1 = pnand %p2084_p13, %p2336_p0 }
  0x48   : > { %p2087_p6 = pneg %p2086_p1 }
  0x4a   : > { %p2092_p9 = pnand %p2090_p5, %p2087_p6 }
  0x4c   : > { %2095 = shalt.err (!%p2092_p9)
}
  0x4d   : > { %s2096_s19 = scalar_lea.vmem %s2326_s28, 128  ;;  %p2104_p4 = scmp.lt.s32.totalorder %s2326_s28, %s2326_s28 }
  0x4e   : > { %p2097_p10 = scmp.ne.s32.totalorder %s2326_s28, %s2096_s19  ;;  %p2105_p7 = scmp.lt.s32.totalorder %s2096_s19, %s2096_s19 }
  0x50   : > { %p2099_p2 = pnand %p2097_p10, %p2336_p0  ;;  %p2106_p8 = por %p2105_p7, %p2104_p4 }
  0x52   : > { %p2100_p3 = pneg %p2099_p2 }
  0x54   : > { %p2107_p11 = pnand %p2106_p8, %p2100_p3 }
  0x56   : > { %2110 = shalt.err (!%p2107_p11)
}
  0x57   : > { %1857 = dma.hbm_to_vmem [thread:$0]  (!%p2320_p12), %s3109_s9, 128, %s2326_s28, [#allocation7]  }
  0x58   : > { %p3178_p13 = scmp.ne.s32.totalorder %s3175_s15, 0 }
  0x59   : > { %p3179_p1 = scmp.eq.s32.totalorder (!%p3178_p13), %s2284_s25, 0 }
  0x5a   : > { %395 = sbr.rel (%p3178_p13) target bundleno = 1421 (0x58d), region = 68 }
  0x61   : > { %2156 = dma.done.wait (%p3179_p1), [#allocation4], 128   ;;  %p3180_p0 = pmov %p3179_p1 }
  0x63   : > { %2158 = vsyncadd (%p3180_p0), [#allocation4], 4294967168  ;;  %p3181_p6 = pmov %p3180_p0 }
  0x64   : > { %p3182_p5 = pmov %p3180_p0 }
  0x65   : > { %2160 = dma.done.wait (%p3181_p6), [#allocation7], 384  }
  0x66   : > { %2162 = vsyncadd (%p3182_p5), [#allocation7], 4294966912  ;;  %p445_p9 = scmp.lt.s32.totalorder %s2284_s25, 1  ;;  %v2186_v0 = vmov 0.0   ;;  %v483_v4 = vld [vmem:[%s3107_s7] sm:$0xff]  ;;  %vm3126_vm0 = vcmask 64512   ;;  %v450_v7 = vlaneseq }
  0x67   : > { %552 = vmatprep.mubr.f32.mxu0 %v2186_v0  ;;  %853 = vmatprep.mubr.f32.mxu1 %v2186_v0  ;;  %s2187_s14 = smov 15   ;;  %s2188_s29 = smov 17   ;;  %v702_v5 = vld [vmem:[%s3102_s2] sm:$0xff]  ;;  %v2195_v6 = vmov 0   ;;  %v3183_v14 = vmov 0  ;;  %v3185_v15 = vmov 0 }
  0x68   : > { %s446_s20 = scalar_select %p445_p9, %s2284_s25, 1  ;;  %1950 = vset.pattern.permute.xlu1 %v2195_v6  ;;  %1991 = vset.pattern.permute.xlu0 %v2195_v6  ;;  %v2442_v8 = vand.u32 127, %v450_v7  ;;  %v3187_v18 = vmov 0  ;;  %v3195_v32 = vmov 0  ;;  %v3197_v39 = vmov 0 }
  0x69   : > { %s2189_s16 = smov 1   ;;  %s2190_s26 = smov 16   ;;  %v3199_v46 = vmov 0  ;;  %v3201_v52 = vmov 0  ;;  %v3203_v54 = vmov 0  ;;  %v3205_v58 = vmov 0 }
  0x6a   : > { %s1572_s28 = sshll.u32 %s446_s20, 4  ;;  %s2191_s30 = smov 127   ;;  %v452_v9 = vadd.s32 128, %v2442_v8  ;;  %v453_v12 = vand.u32 15, %v2442_v8  ;;  %v455_v13 = vshra.s32 %v2442_v8, 4  ;;  %vm3128_vm6 = vcmp.lt.s32.totalorder %v2442_v8, 15 }
  0x6b   : > { %s449_s24 = scalar_lea.vmem %s3100_s0, %s1572_s28  ;;  %s2192_s19 = smov 113   ;;  %vm3124_vm7 = vcmp.lt.s32.totalorder %v2442_v8, 17  ;;  %vm3129_vm9 = vcmp.lt.s32.totalorder %v2442_v8, 1  ;;  %vm3123_vm10 = vcmp.lt.s32.totalorder %v2442_v8, 16  ;;  %vm3131_vm14 = vcmp.lt.s32.totalorder %v2442_v8, 127 }
  0x6c   : > { %v2415_v1 = vld [vmem:[%s449_s24] sm:$0xff]  ;;  %v2417_v2 = vld [vmem:[%s449_s24 + $0x8] sm:$0xff]  ;;  %s2193_s17 = smov 112   ;;  %s2194_s21 = smov 111   ;;  %v454_v10 = vand.u32 15, %v452_v9  ;;  %v456_v11 = vshra.s32 %v452_v9, 4 }
  0x6d   : > { %v1925_v3 = vpack.i.bf16 %v2417_v2, %v2415_v1  ;;  %488 = vmatprep.subr.mxu0 %v2417_v2  ;;  %vm2457_vm3 = vcmp.ge.s32.totalorder %v455_v13, 1  ;;  %vm2461_vm4 = vcmp.ge.s32.totalorder %v453_v12, 1  ;;  %vm2481_vm12 = vcmp.le.s32.totalorder %v453_v12, 14  ;;  %s442_s28 = sand.u32 1, %s2173_s22   ;;  %s1573_s15 = sshll.u32 %s2284_s25, 8 }
  0x6e   : > { %489 = vmatpush1.msra.mxu0 %v2415_v1  ;;  %vm2447_vm1 = vcmp.ge.s32.totalorder %v456_v11, 1  ;;  %vm2451_vm2 = vcmp.ge.s32.totalorder %v454_v10, 1  ;;  %v3188_v18 = vsel %vm2457_vm3, 4294967295, %v3187_v18  ;;  %vm2471_vm8 = vcmp.le.s32.totalorder %v454_v10, 14  ;;  %vm3125_vm11 = vmand %vm2457_vm3, %vm2461_vm4  ;;  %s1557_s18 = sshll.u32 %s442_s28, 4  ;;  %p3300_p10 = scmp.ne.s32.totalorder %s3172_s13, 0 }
  0x6f   : > { %1926 = vrot.lane.b32.xlu1 %v1925_v3, %s2187_s14  ;;  %1916 = vrot.lane.b32.xlu0 %v1925_v3, %s2188_s29  ;;  %v3184_v14 = vsel %vm2447_vm1, 4294967295, %v3183_v14  ;;  %v3186_v15 = vsel %vm2451_vm2, 4294967295, %v3185_v15  ;;  %vm3122_vm5 = vmand %vm2447_vm1, %vm2451_vm2  ;;  %v3215_v10 = vmov 0  ;;  %s444_s24 = scalar_lea.vmem [#allocation9], %s1557_s18 }
  0x70   : > { %1560 = vmatmul.mubr.msk.f32.vlgmr.msra.gmra.mrb[0].mxu0 %vm3126_vm0, %v483_v4  ;;  %vm2492_vm13 = vmpackc.low %vm2447_vm1, %vm3122_vm5  ;;  %vm2553_vm0 = vcmp.le.s32.totalorder %v456_v11, 14  ;;  %s1457_s23 = sshll.u32 %s444_s24, 4  ;;  %s3060_s23 = int_to_ptr.vmem [resolvable:$true] %s1457_s23 }
  0x71   : > { %776 = vmatprep.mubr.f32.mxu0 %v2186_v0  ;;  %v3196_v32 = vsel %vm2492_vm13, 4294967295, %v3195_v32  ;;  %vm3127_vm15 = vmand %vm2447_vm1, %vm2471_vm8  ;;  %v3202_v52 = vsel %vm2553_vm0, 4294967295, %v3201_v52  ;;  %s2111_s25 = scalar_lea.vmem %s3060_s23, 256 }
  0x72   : > { %vm2520_vm5 = vmpackc.low %vm2457_vm3, %vm3125_vm11  ;;  %p2112_p12 = scmp.ne.s32.totalorder %s3060_s23, %s2111_s25 }
  0x73   : > { %1931 = vrot.lane.b32.xlu1 %v1925_v3, %s2189_s16  ;;  %1921 = vrot.lane.b32.xlu0 %v1925_v3, %s2190_s26  ;;  %v3198_v39 = vsel %vm2520_vm5, 4294967295, %v3197_v39  ;;  %vm2540_vm11 = vmpackc.low %vm2451_vm2, %vm3127_vm15 }
  0x74   : > { %v3200_v46 = vsel %vm2540_vm11, 4294967295, %v3199_v46  ;;  %p2113_p2 = pnand %p2112_p12, %p3300_p10 }
  0x76   : > { %p2114_p3 = pneg %p2113_p2 }
  0x77   : > { %1936 = vrot.lane.b32.xlu0 %v1925_v3, %s2191_s30  ;;  %1941 = vrot.lane.b32.xlu1 %v1925_v3, %s2192_s19 }
  0x7b   : > { %1946 = vrot.lane.b32.xlu0 %v1925_v3, %s2193_s17  ;;  %668 = vrot.lane.b32.xlu1 %v2415_v1, %s2194_s21 }
  0x7f   : > { %670 = vrot.lane.b32.xlu0 %v2417_v2, %s2194_s21  ;;  %705 = vperm.xlu1 %1950, %v702_v5   ;;  %v3210_v5 = vmov 0 }
  0xe1   : > { %v1927_v16 = vpop.permute.xlu1 %1926  ;;  %v1917_v17 = vpop.permute.xlu0 %1916 }
  0xe2   : > { %v1929_v20 = vunpack.i.h.bf16 %v1927_v16  ;;  %v1928_v21 = vunpack.i.l.bf16 %v1927_v16  ;;  %v1919_v22 = vunpack.i.h.bf16 %v1917_v17  ;;  %v1918_v23 = vunpack.i.l.bf16 %v1917_v17 }
  0xe3   : > { %v3217_v16 = vmov 0 }
  0xe4   : > { %v596_v33 = vsel %vm3128_vm6, %v1928_v21, %v1929_v20  ;;  %v566_v34 = vsel %vm3124_vm7, %v1918_v23, %v1919_v22  ;;  %v567_v35 = vsel %vm3124_vm7, %v1919_v22, %v1918_v23  ;;  %vm3132_vm7 = vcmp.lt.s32.totalorder %v2442_v8, 113  ;;  %v683_v23 = vld [vmem:[#allocation3] sm:$0xff] }
  0xe5   : > { %v1932_v25 = vpop.permute.xlu1 %1931  ;;  %v1922_v26 = vpop.permute.xlu0 %1921  ;;  %v597_v49 = vsel %vm3128_vm6, %v1929_v20, %v1928_v21  ;;  %vm2599_vm6 = vcmp.le.s32.totalorder %v455_v13, 14 }
  0xe6   : > { %v1934_v28 = vunpack.i.h.bf16 %v1932_v25  ;;  %v1933_v29 = vunpack.i.l.bf16 %v1932_v25  ;;  %v1924_v30 = vunpack.i.h.bf16 %v1922_v26  ;;  %v1923_v31 = vunpack.i.l.bf16 %v1922_v26 }
  0xe8   : > { %v611_v36 = vsel %vm3129_vm9, %v1933_v29, %v1934_v28  ;;  %v581_v37 = vsel %vm3123_vm10, %v1923_v31, %v1924_v30  ;;  %v582_v38 = vsel %vm3123_vm10, %v1924_v30, %v1923_v31  ;;  %vm3130_vm10 = vmand %vm2457_vm3, %vm2481_vm12  ;;  %v612_v50 = vsel %vm3129_vm9, %v1934_v28, %v1933_v29 }
  0xe9   : > { %v2524_v40 = vpack.c.bf16 %v581_v37, %v566_v34  ;;  %v2526_v41 = vpack.c.bf16 %v582_v38, %v567_v35  ;;  %v1937_v42 = vpop.permute.xlu0 %1936  ;;  %v1942_v43 = vpop.permute.xlu1 %1941  ;;  %v2548_v51 = vpack.c.bf16 %v611_v36, %v596_v33  ;;  %vm2569_vm15 = vmpackc.low %vm2461_vm4, %vm3130_vm10  ;;  %vm3137_vm9 = vmmov 1   ;;  %v945_v37 = vld [vmem:[#allocation6 + $0x8] sm:$0xff]  ;;  %v982_v38 = vld [vmem:[%s3104_s4] sm:$0xff] }
  0xea   : > { %v1939_v44 = vunpack.i.h.bf16 %v1937_v42  ;;  %v1938_v45 = vunpack.i.l.bf16 %v1937_v42  ;;  %v1944_v47 = vunpack.i.h.bf16 %v1942_v43  ;;  %v1943_v48 = vunpack.i.l.bf16 %v1942_v43  ;;  %vm2585_vm10 = vmpackc.low %vm2471_vm8, %vm3137_vm9  ;;  %v785_v42 = vld [vmem:[%s3108_s8] sm:$0xff] }
  0xeb   : > { %1672 = vmatprep.subr.msk.bf16.mxu0 %vm2492_vm13, %v2524_v40  ;;  %v3204_v54 = vsel %vm2569_vm15, 4294967295, %v3203_v54  ;;  %v3206_v58 = vsel %vm2585_vm10, 4294967295, %v3205_v58  ;;  %v2589_v59 = vpack.c.bf16 %v612_v50, %v597_v49  ;;  %vm3212_vm3 = vcmp.lt.s32.totalorder %v2442_v8, 113 }
  0xec   : > { %1675 = vmatpush1.bf16.msk.msra.mxu0 %vm2520_vm5, %v2526_v41  ;;  %v629_v53 = vsel %vm3131_vm14, %v1939_v44, %v1938_v45  ;;  %v628_v55 = vsel %vm3131_vm14, %v1938_v45, %v1939_v44  ;;  %v644_v60 = vsel %vm3132_vm7, %v1944_v47, %v1943_v48  ;;  %vm3209_vm7 = vcmp.lt.s32.totalorder %v2442_v8, 112  ;;  %vm2614_vm14 = vmpackc.low %vm2481_vm12, %vm3137_vm9 }
  0xed   : > { %v2576_v56 = vpack.c.bf16 %v629_v53, %v2417_v2  ;;  %1678 = vmatprep.subr.msk.bf16.mxu0 %vm2540_vm11, %v2548_v51  ;;  %v1947_v57 = vpop.permute.xlu0 %1946  ;;  %v2604_v3 = vpack.c.bf16 %v628_v55, %v2415_v1  ;;  %v3211_v5 = vsel %vm2614_vm14, 4294967295, %v3210_v5  ;;  %v643_v6 = vsel %vm3212_vm3, %v1943_v48, %v1944_v47  ;;  %vm3213_vm1 = vmmov %vm3209_vm7  ;;  %v669_v11 = vpop.permute.xlu1 %668 }
  0xee   : > { %v1949_v61 = vunpack.i.h.bf16 %v1947_v57  ;;  %v1948_v62 = vunpack.i.l.bf16 %v1947_v57  ;;  %vm3144_vm3 = vcmp.lt.s32.totalorder %v2442_v8, 111 }
  0xf0   : > { %1681 = vmatpush1.bf16.msk.msra.mxu0 %vm2569_vm15, %v2589_v59  ;;  %v659_v4 = vsel %vm3209_vm7, %v1949_v61, %v1948_v62  ;;  %v658_v7 = vsel %vm3213_vm1, %v1948_v62, %v1949_v61  ;;  %vm3214_vm7 = vmand %vm2553_vm0, %vm2451_vm2 }
  0xf1   : > { %v2622_v9 = vpack.c.bf16 %v659_v4, %v644_v60  ;;  %1684 = vmatprep.subr.msk.bf16.mxu0 %vm2585_vm10, %v2576_v56  ;;  %vm2634_vm9 = vmpackc.low %vm2553_vm0, %vm3214_vm7  ;;  %v671_v12 = vpop.permute.xlu0 %670  ;;  %v2643_v13 = vpack.c.bf16 %v658_v7, %v643_v6  ;;  %v3233_v4 = vmov 0 }
  0xf2   : > { %v3216_v10 = vsel %vm2634_vm9, 4294967295, %v3215_v10  ;;  %vm3141_vm1 = vmand %vm2599_vm6, %vm2461_vm4  ;;  %v674_v17 = vsel %vm3144_vm3, %v671_v12, %v669_v11  ;;  %v673_v21 = vsel %vm3144_vm3, %v669_v11, %v671_v12  ;;  %vm3223_vm3 = vcmask 64512  }
  0xf3   : > { %vm2658_vm7 = vmpackc.low %vm2599_vm6, %vm3141_vm1 }
  0xf4   : > { %1687 = vmatpush1.bf16.msk.msra.mxu0 %vm2614_vm14, %v2604_v3  ;;  %v3218_v16 = vsel %vm2658_vm7, 4294967295, %v3217_v16  ;;  %vm2668_vm2 = vmand %vm2553_vm0, %vm2471_vm8  ;;  %vm708_vm0 = vcmask 588800  }
  0xf5   : > { %1690 = vmatprep.subr.msk.bf16.mxu0 %vm2634_vm9, %v2622_v9  ;;  %vm2683_vm1 = vmand %vm2599_vm6, %vm2481_vm12 }
  0xf8   : > { %1693 = vmatpush1.bf16.msk.msra.mxu0 %vm2658_vm7, %v2643_v13 }
  0xf9   : > { %1588 = vmatprep.subr.msk.mxu0 %vm2668_vm2, %v674_v17 }
  0xfc   : > { %1589 = vmatpush1.msk.msra.mxu0 %vm2683_vm1, %v673_v21 }
  0xfd   : > { %1561 = vmatmul.mubr.msk.f32.vlgmr.msra.gmra.mrb[2].mxu0 %vm708_vm0, %v683_v23  ;;  %1696 = vmatprep.subr.msk.bf16.mxu0 %vm2492_vm13, %v2524_v40  ;;  %vm988_vm0 = vcmask 130048  }
  0xfe   : > { %1699 = vmatpush1.bf16.msk.msra.mxu0 %vm2520_vm5, %v2526_v41  ;;  %v706_v28 = vpop.permute.xlu1 %705  ;;  %1563 = vmatprep.mubr.msk.f32.mxu0 %vm988_vm0, %v945_v37  ;;  %vm3224_vm0 = vcmp.lt.s32.totalorder %v2442_v8, 17  ;;  %vm3237_vm5 = vcmp.lt.s32.totalorder %v2442_v8, 1 }
  0xff   : > { %1702 = vmatprep.subr.msk.bf16.mxu0 %vm2540_vm11, %v2548_v51 }
 0x102   : > { %1705 = vmatpush1.bf16.msk.msra.mxu0 %vm2569_vm15, %v2589_v59 }
 0x103   : > { %1708 = vmatprep.subr.msk.bf16.mxu0 %vm2585_vm10, %v2576_v56 }
 0x106   : > { %1711 = vmatpush1.bf16.msk.msra.mxu0 %vm2614_vm14, %v2604_v3 }
 0x107   : > { %1714 = vmatprep.subr.msk.bf16.mxu0 %vm2634_vm9, %v2622_v9  ;;  %vm3226_vm9 = vnez %v3184_v14  ;;  %v3244_v14 = vmov 0 }
 0x10a   : > { %1717 = vmatpush1.bf16.msk.msra.mxu0 %vm2658_vm7, %v2643_v13  ;;  %vm3225_vm7 = vmmov %vm3224_vm0 }
 0x143   : > { %v2713_v25 = vpop.f32.mrb[0].mxu0 }
 0x144   : > { %v2715_v26 = vpop.f32.mrb[1].mxu0 }
 0x1d0   : > { %v778_v29 = vpop.f32.mrb[2].mxu0 }
 0x1d1   : > { %v779_v30 = vadd.f32 %v778_v29, %v706_v28  ;;  %v780_v31 = vpop.f32.mrb[3].mxu0 }
 0x1d2   : > { %v781_v33 = vadd.f32 %v780_v31, %v706_v28 }
 0x1d3   : > { %v2717_v34 = vmax.f32 %v779_v30, 0.0  ;;  %v3241_v30 = vmov 0 }
 0x1d4   : > { %v784_v35 = vmax.f32 %v781_v33, 0.0 }
 0x1d6   : > { %789 = vmatprep.subr.mxu1 %v784_v35  ;;  %v1956_v36 = vpack.i.bf16 %v784_v35, %v2717_v34 }
 0x1d7   : > { %790 = vmatpush1.msra.mxu1 %v2717_v34 }
 0x1d8   : > { %1957 = vrot.lane.b32.xlu1 %v1956_v36, %s2190_s26  ;;  %1952 = vrot.lane.b32.xlu0 %v1956_v36, %s2188_s29 }
 0x1d9   : > { %1562 = vmatmul.mubr.msk.f32.vlgmr.msra.gmra.mrb[0].mxu1 %vm3223_vm3, %v785_v42  ;;  %vm3227_vm3 = vnez %v3186_v15 }
 0x1da   : > { %1133 = vmatprep.mubr.f32.mxu1 %v2186_v0  ;;  %vm3228_vm14 = vmand %vm3226_vm9, %vm3227_vm3 }
 0x1db   : > { %vm2748_vm10 = vmpackc.low %vm3228_vm14, %vm2668_vm2  ;;  %vm3235_vm14 = vcmp.lt.s32.totalorder %v2442_v8, 16 }
 0x1dc   : > { %1967 = vrot.lane.b32.xlu1 %v1956_v36, %s2189_s16  ;;  %1962 = vrot.lane.b32.xlu0 %v1956_v36, %s2187_s14  ;;  %vm3236_vm11 = vmmov %vm3235_vm14 }
 0x1e0   : > { %1977 = vrot.lane.b32.xlu1 %v1956_v36, %s2192_s19  ;;  %1972 = vrot.lane.b32.xlu0 %v1956_v36, %s2191_s30 }
 0x1e4   : > { %1987 = vrot.lane.b32.xlu1 %v1956_v36, %s2194_s21  ;;  %1982 = vrot.lane.b32.xlu0 %v1956_v36, %s2193_s17 }
 0x1e8   : > { %985 = vperm.xlu0 %1991, %v982_v38  }
 0x24a   : > { %v1958_v43 = vpop.permute.xlu1 %1957  ;;  %v1953_v44 = vpop.permute.xlu0 %1952 }
 0x24b   : > { %v1955_v45 = vunpack.i.h.bf16 %v1953_v44  ;;  %v1954_v47 = vunpack.i.l.bf16 %v1953_v44  ;;  %v1960_v48 = vunpack.i.h.bf16 %v1958_v43  ;;  %v1959_v49 = vunpack.i.l.bf16 %v1958_v43 }
 0x24d   : > { %v866_v50 = vsel %vm3224_vm0, %v1954_v47, %v1955_v45  ;;  %v867_v53 = vsel %vm3225_vm7, %v1955_v45, %v1954_v47  ;;  %vm3231_vm7 = vnez %v3188_v18  ;;  %v3247_v47 = vmov 0 }
 0x24e   : > { %v2752_v57 = vpack.c.bf16 %v866_v50, %v674_v17  ;;  %v2754_v60 = vpack.c.bf16 %v867_v53, %v673_v21  ;;  %v1968_v61 = vpop.permute.xlu1 %1967  ;;  %v1963_v62 = vpop.permute.xlu0 %1962  ;;  %vm3232_vm0 = vmand %vm3231_vm7, %vm2461_vm4  ;;  %v876_v17 = vsel %vm3235_vm14, %v1959_v49, %v1960_v48  ;;  %v877_v21 = vsel %vm3236_vm11, %v1960_v48, %v1959_v49 }
 0x24f   : > { %vm2763_vm15 = vmpackc.low %vm3232_vm0, %vm2683_vm1  ;;  %v1970_v6 = vunpack.i.h.bf16 %v1968_v61  ;;  %v1969_v7 = vunpack.i.l.bf16 %v1968_v61  ;;  %v1965_v11 = vunpack.i.h.bf16 %v1963_v62  ;;  %v1964_v12 = vunpack.i.l.bf16 %v1963_v62 }
 0x250   : > { %v3234_v4 = vsel %vm2763_vm15, 4294967295, %v3233_v4  ;;  %1720 = vmatprep.subr.msk.bf16.mxu0 %vm2748_vm10, %v2752_v57  ;;  %vm3238_vm0 = vcmp.lt.s32.totalorder %v2442_v8, 15  ;;  %vm3240_vm11 = vmand %vm3226_vm9, %vm2471_vm8 }
 0x251   : > { %v896_v23 = vsel %vm3237_vm5, %v1969_v7, %v1970_v6  ;;  %v886_v28 = vsel %vm3238_vm0, %v1964_v12, %v1965_v11  ;;  %vm3239_vm13 = vmmov %vm3238_vm0  ;;  %1723 = vmatpush1.bf16.msk.msra.mxu0 %vm2763_vm15, %v2754_v60  ;;  %v897_v31 = vsel %vm3237_vm5, %v1970_v6, %v1969_v7  ;;  %vm3246_vm0 = vmmov 1  }
 0x252   : > { %v887_v29 = vsel %vm3239_vm13, %v1965_v11, %v1964_v12  ;;  %vm2790_vm14 = vmpackc.low %vm3240_vm11, %vm3226_vm9  ;;  %v2796_v33 = vpack.c.bf16 %v886_v28, %v876_v17  ;;  %v1978_v37 = vpop.permute.xlu1 %1977  ;;  %v1973_v38 = vpop.permute.xlu0 %1972  ;;  %v2818_v48 = vpack.c.bf16 %v784_v35, %v896_v23  ;;  %vm3250_vm5 = vcmp.lt.s32.totalorder %v2442_v8, 127 }
 0x253   : > { %v3242_v30 = vsel %vm2790_vm14, 4294967295, %v3241_v30  ;;  %v2798_v36 = vpack.c.bf16 %v887_v29, %v877_v21  ;;  %vm3243_vm13 = vmand %vm3231_vm7, %vm2481_vm12  ;;  %v1980_v42 = vunpack.i.h.bf16 %v1978_v37  ;;  %v1979_v43 = vunpack.i.l.bf16 %v1978_v37  ;;  %v944_v37 = vld [vmem:[#allocation6] sm:$0xff] }
 0x254   : > { %vm2807_vm9 = vmpackc.low %vm3243_vm13, %vm3231_vm7  ;;  %v1975_v44 = vunpack.i.h.bf16 %v1973_v38  ;;  %v1974_v45 = vunpack.i.l.bf16 %v1973_v38  ;;  %1726 = vmatprep.subr.msk.bf16.mxu0 %vm2790_vm14, %v2796_v33  ;;  %vm3249_vm7 = vcmp.lt.s32.totalorder %v2442_v8, 113  ;;  %v2831_v50 = vpack.c.bf16 %v2717_v34, %v897_v31 }
 0x255   : > { %v3245_v14 = vsel %vm2807_vm9, 4294967295, %v3244_v14  ;;  %vm2814_vm11 = vmpackc.low %vm3246_vm0, %vm3227_vm3  ;;  %v919_v18 = vsel %vm3249_vm7, %v1980_v42, %v1979_v43  ;;  %1729 = vmatpush1.bf16.msk.msra.mxu0 %vm2807_vm9, %v2798_v36  ;;  %vm3253_vm7 = vnez %v3202_v52  ;;  %vm3259_vm14 = vcmp.lt.s32.totalorder %v2442_v8, 111 }
 0x256   : > { %v3248_v47 = vsel %vm2814_vm11, 4294967295, %v3247_v47  ;;  %v909_v49 = vsel %vm3250_vm5, %v1975_v44, %v1974_v45  ;;  %v1988_v53 = vpop.permute.xlu1 %1987  ;;  %v1983_v35 = vpop.permute.xlu0 %1982  ;;  %1732 = vmatprep.subr.msk.bf16.mxu0 %vm2814_vm11, %v2818_v48  ;;  %vm2839_vm13 = vmpackc.low %vm3246_vm0, %vm2461_vm4  ;;  %vm3257_vm0 = vcmp.lt.s32.totalorder %v2442_v8, 113  ;;  %vm3258_vm11 = vcmp.lt.s32.totalorder %v2442_v8, 127 }
 0x257   : > { %v1990_v62 = vunpack.i.h.bf16 %v1988_v53  ;;  %v1989_v6 = vunpack.i.l.bf16 %v1988_v53  ;;  %v1985_v7 = vunpack.i.h.bf16 %v1983_v35  ;;  %v1984_v11 = vunpack.i.l.bf16 %v1983_v35  ;;  %vm3254_vm5 = vmand %vm3253_vm7, %vm3227_vm3  ;;  %v1065_v35 = vld [vmem:[#allocation8] sm:$0xff] }
 0x258   : > { %vm2850_vm9 = vmpackc.low %vm3254_vm5, %vm2471_vm8  ;;  %v918_v12 = vsel %vm3257_vm0, %v1979_v43, %v1980_v42  ;;  %v908_v17 = vsel %vm3258_vm11, %v1974_v45, %v1975_v44  ;;  %v1736_v21 = vpack.c.bf16 %v919_v18, %v909_v49  ;;  %vm3260_vm15 = vcmp.lt.s32.totalorder %v2442_v8, 112 }
 0x259   : > { %v939_v23 = vsel %vm3259_vm14, %v1990_v62, %v1989_v6  ;;  %v929_v24 = vsel %vm3260_vm15, %v1985_v7, %v1984_v11  ;;  %1735 = vmatpush1.bf16.msk.msra.mxu0 %vm2839_vm13, %v2831_v50  ;;  %vm3261_vm8 = vmand %vm2599_vm6, %vm2461_vm4  ;;  %v1739_v28 = vpack.c.bf16 %v918_v12, %v908_v17  ;;  %v938_v29 = vsel %vm3259_vm14, %v1989_v6, %v1990_v62 }
 0x25a   : > { %1738 = vmatprep.subr.msk.bf16.mxu0 %vm2850_vm9, %v1736_v21  ;;  %vm2874_vm3 = vmpackc.low %vm3261_vm8, %vm2481_vm12  ;;  %vm3264_vm11 = vcmp.lt.s32.totalorder %v2442_v8, 112  ;;  %v1742_v31 = vpack.c.bf16 %v939_v23, %v929_v24  ;;  %vm3265_vm12 = vcmask 64512   ;;  %vm3266_vm5 = vnez %v3196_v32 }
 0x25b   : > { %vm3166_vm15 = vmpackc.low %vm2668_vm2, %vm3253_vm7  ;;  %v928_v27 = vsel %vm3264_vm11, %v1984_v11, %v1985_v7  ;;  %vm3267_vm0 = vnez %v3198_v39  ;;  %vm3268_vm8 = vnez %v3200_v46  ;;  %vm3269_vm14 = vnez %v3204_v54 }
 0x25c   : > { %vm3165_vm4 = vmpackc.low %vm2683_vm1, %vm2599_vm6  ;;  %v1745_v19 = vpack.c.bf16 %v938_v29, %v928_v27  ;;  %vm3270_vm11 = vnez %v3206_v58 }
 0x25d   : > { %1741 = vmatpush1.bf16.msk.msra.mxu0 %vm2874_vm3, %v1739_v28 }
 0x25e   : > { %1744 = vmatprep.subr.msk.bf16.mxu0 %vm3166_vm15, %v1742_v31  ;;  %vm1286_vm15 = vcmask 719872  }
 0x261   : > { %1747 = vmatpush1.bf16.msk.msra.mxu0 %vm3165_vm4, %v1745_v19  ;;  %vm3272_vm4 = vnez %v3216_v10 }
 0x264   : > { %1057 = vmatmul.mubr.f32.vlgmr.msra.gmra.mrb[4].mxu0 %v944_v37 }
 0x265   : > { %1431 = vmatprep.mubr.f32.mxu0 %v2186_v0  ;;  %v475_v0 = vld [vmem:[%s3111_s11] sm:$0xff] }
 0x267   : > { %v986_v38 = vpop.permute.xlu0 %985 }
 0x337   : > { %v1058_v42 = vpop.f32.mrb[4].mxu0 }
 0x338   : > { %v1059_v43 = vadd.f32 %v1058_v42, %v986_v38  ;;  %v1060_v44 = vpop.f32.mrb[5].mxu0 }
 0x339   : > { %v1061_v45 = vadd.f32 %v1060_v44, %v986_v38 }
 0x33a   : > { %v2903_v18 = vmax.f32 %v1059_v43, 0.0 }
 0x33b   : > { %v2905_v49 = vmax.f32 %v1061_v45, 0.0 }
 0x33d   : > { %1069 = vmatprep.subr.mxu1 %v2905_v49  ;;  %v2002_v53 = vpack.i.bf16 %v2905_v49, %v2903_v18 }
 0x33e   : > { %1070 = vmatpush1.msra.mxu1 %v2903_v18 }
 0x33f   : > { %2003 = vrot.lane.b32.xlu0 %v2002_v53, %s2187_s14  ;;  %1993 = vrot.lane.b32.xlu1 %v2002_v53, %s2188_s29  ;;  %s3058_s29 = scalar_lea.hbm %s3112_s12, %s1573_s15 }
 0x340   : > { %1564 = vmatmul.mubr.msk.f32.vlgmr.msra.gmra.mrb[0].mxu1 %vm3265_vm12, %v1065_v35  ;;  %1750 = vmatprep.subr.msk.bf16.mxu1 %vm3266_vm5, %v2524_v40  ;;  %vm3271_vm12 = vnez %v3211_v5  ;;  %v1225_v40 = vld [vmem:[%s3105_s5 + $0x8] sm:$0xff] }
 0x341   : > { %1753 = vmatpush1.bf16.msk.msra.mxu1 %vm3267_vm0, %v2526_v41  ;;  %1565 = vmatprep.mubr.msk.f32.mxu1 %vm1286_vm15, %v1225_v40  ;;  %v1280_v41 = vld [vmem:[%s3106_s6] sm:$0xff]  ;;  %vm3277_vm15 = vnez %v3248_v47 }
 0x342   : > { %1756 = vmatprep.subr.msk.bf16.mxu1 %vm3268_vm8, %v2548_v51 }
 0x343   : > { %2013 = vrot.lane.b32.xlu0 %v2002_v53, %s2191_s30  ;;  %1998 = vrot.lane.b32.xlu1 %v2002_v53, %s2190_s26  ;;  %s1443_s26 = scalar_lea.sflag [#allocation5], %s442_s28 }
 0x345   : > { %1759 = vmatpush1.bf16.msk.msra.mxu1 %vm3269_vm14, %v2589_v59 }
 0x346   : > { %1762 = vmatprep.subr.msk.bf16.mxu1 %vm3270_vm11, %v2576_v56 }
 0x347   : > { %2023 = vrot.lane.b32.xlu0 %v2002_v53, %s2193_s17  ;;  %2008 = vrot.lane.b32.xlu1 %v2002_v53, %s2189_s16  ;;  %s2197_s16 = smov [#allocation9]  }
 0x348   : > { %s2115_s30 = sshll.u32 %s2197_s16, 4  ;;  %s2116_s30 = int_to_ptr.vmem [resolvable:$false] %s2115_s30 }
 0x349   : > { %1765 = vmatpush1.bf16.msk.msra.mxu1 %vm3271_vm12, %v2604_v3  ;;  %vm3273_vm12 = vnez %v3218_v16  ;;  %p2118_p4 = scmp.lt.s32.totalorder %s3060_s23, %s2116_s30 }
 0x34a   : > { %1768 = vmatprep.subr.msk.bf16.mxu1 %vm3272_vm4, %v2622_v9  ;;  %vm3274_vm4 = vnez %v3234_v4 }
 0x34b   : > { %1216 = vrot.lane.b32.xlu0 %v2905_v49, %s2194_s21  ;;  %2018 = vrot.lane.b32.xlu1 %v2002_v53, %s2192_s19  ;;  %s2117_s19 = scalar_lea.vmem %s2116_s30, 512 }
 0x34c   : > { %p2119_p7 = scmp.lt.s32.totalorder %s2117_s19, %s2111_s25 }
 0x34d   : > { %1771 = vmatpush1.bf16.msk.msra.mxu1 %vm3273_vm12, %v2643_v13  ;;  %vm3275_vm12 = vnez %v3242_v30 }
 0x34e   : > { %1774 = vmatprep.subr.msk.bf16.mxu1 %vm2748_vm10, %v2752_v57  ;;  %vm3276_vm10 = vnez %v3245_v14  ;;  %p2120_p8 = por %p2119_p7, %p2118_p4 }
 0x34f   : > { %478 = vperm.xlu0 %1991, %v475_v0   ;;  %1214 = vrot.lane.b32.xlu1 %v2903_v18, %s2194_s21 }
 0x350   : > { %p2121_p11 = pnand %p2120_p8, %p2114_p3 }
 0x351   : > { %1777 = vmatpush1.bf16.msk.msra.mxu1 %vm3274_vm4, %v2754_v60  ;;  %vm3278_vm4 = vmpackc.low %vm2668_vm2, %vm3253_vm7 }
 0x352   : > { %1780 = vmatprep.subr.msk.bf16.mxu1 %vm3275_vm12, %v2796_v33  ;;  %vm3279_vm12 = vmpackc.low %vm2683_vm1, %vm2599_vm6  ;;  %vm3282_vm6 = vcmp.lt.s32.totalorder %v2442_v8, 16 }
 0x353   : > { %1283 = vperm.xlu1 %1950, %v1280_v41   ;;  %vm3283_vm7 = vmmov %vm3282_vm6 }
 0x355   : > { %1783 = vmatpush1.bf16.msk.msra.mxu1 %vm3276_vm10, %v2798_v36 }
 0x356   : > { %1786 = vmatprep.subr.msk.bf16.mxu1 %vm3277_vm15, %v2818_v48  ;;  %vm3286_vm15 = vcmp.lt.s32.totalorder %v2442_v8, 127 }
 0x359   : > { %1789 = vmatpush1.bf16.msk.msra.mxu1 %vm2839_vm13, %v2831_v50 }
 0x35a   : > { %1792 = vmatprep.subr.msk.bf16.mxu1 %vm2850_vm9, %v1736_v21  ;;  %vm3280_vm9 = vcmp.lt.s32.totalorder %v2442_v8, 17 }
 0x35b   : > { %vm3281_vm13 = vmmov %vm3280_vm9 }
 0x35d   : > { %1795 = vmatpush1.bf16.msk.msra.mxu1 %vm2874_vm3, %v1739_v28  ;;  %vm3284_vm3 = vcmp.lt.s32.totalorder %v2442_v8, 15 }
 0x35e   : > { %1798 = vmatprep.subr.msk.bf16.mxu1 %vm3278_vm4, %v1742_v31  ;;  %vm3285_vm10 = vmmov %vm3284_vm3  ;;  %vm3287_vm4 = vcmp.lt.s32.totalorder %v2442_v8, 1 }
 0x361   : > { %1801 = vmatpush1.bf16.msk.msra.mxu1 %vm3279_vm12, %v1745_v19  ;;  %vm3288_vm12 = vmmov %vm3287_vm4 }
 0x3b1   : > { %v2004_v51 = vpop.permute.xlu0 %2003  ;;  %v1994_v56 = vpop.permute.xlu1 %1993 }
 0x3b2   : > { %v1996_v59 = vunpack.i.h.bf16 %v1994_v56  ;;  %v1995_v3 = vunpack.i.l.bf16 %v1994_v56  ;;  %v2006_v60 = vunpack.i.h.bf16 %v2004_v51  ;;  %v2005_v4 = vunpack.i.l.bf16 %v2004_v51 }
 0x3b4   : > { %v1146_v52 = vsel %vm3280_vm9, %v1995_v3, %v1996_v59  ;;  %v1147_v30 = vsel %vm3281_vm13, %v1996_v59, %v1995_v3  ;;  %v1166_v6 = vsel %vm3284_vm3, %v2005_v4, %v2006_v60  ;;  %v1167_v11 = vsel %vm3285_vm10, %v2006_v60, %v2005_v4 }
 0x3b5   : > { %v2014_v9 = vpop.permute.xlu0 %2013  ;;  %v1999_v13 = vpop.permute.xlu1 %1998  ;;  %vm3290_vm9 = vcmp.lt.s32.totalorder %v2442_v8, 113 }
 0x3b6   : > { %v2001_v55 = vunpack.i.h.bf16 %v1999_v13  ;;  %v2000_v57 = vunpack.i.l.bf16 %v1999_v13  ;;  %v2016_v33 = vunpack.i.h.bf16 %v2014_v9  ;;  %v2015_v63 = vunpack.i.l.bf16 %v2014_v9  ;;  %vm3292_vm13 = vmmov %vm3290_vm9 }
 0x3b8   : > { %v1156_v36 = vsel %vm3282_vm6, %v2000_v57, %v2001_v55  ;;  %v1157_v14 = vsel %vm3283_vm7, %v2001_v55, %v2000_v57  ;;  %v1189_v34 = vsel %vm3286_vm15, %v2016_v33, %v2015_v63  ;;  %vm3297_vm7 = vnez %v3218_v16 }
 0x3b9   : > { %v1802_v47 = vpack.c.bf16 %v1156_v36, %v1146_v52  ;;  %v1805_v48 = vpack.c.bf16 %v1157_v14, %v1147_v30  ;;  %v2009_v50 = vpop.permute.xlu1 %2008  ;;  %v2024_v7 = vpop.permute.xlu0 %2023  ;;  %v1814_v31 = vpack.c.bf16 %v1189_v34, %v2905_v49 }
 0x3ba   : > { %v2011_v61 = vunpack.i.h.bf16 %v2009_v50  ;;  %v2010_v62 = vunpack.i.l.bf16 %v2009_v50  ;;  %v2026_v32 = vunpack.i.h.bf16 %v2024_v7  ;;  %v2025_v15 = vunpack.i.l.bf16 %v2024_v7 }
 0x3bb   : > { %1804 = vmatprep.subr.msk.bf16.mxu1 %vm3266_vm5, %v1802_v47  ;;  %vm3289_vm5 = vmmov %vm3286_vm15 }
 0x3bc   : > { %v1176_v12 = vsel %vm3287_vm4, %v2010_v62, %v2011_v61  ;;  %v1177_v17 = vsel %vm3288_vm12, %v2011_v61, %v2010_v62  ;;  %1807 = vmatpush1.bf16.msk.msra.mxu1 %vm3267_vm0, %v1805_v48  ;;  %v1188_v27 = vsel %vm3289_vm5, %v2015_v63, %v2016_v33  ;;  %vm3291_vm0 = vcmp.lt.s32.totalorder %v2442_v8, 112 }
 0x3bd   : > { %v1808_v21 = vpack.c.bf16 %v1176_v12, %v1166_v6  ;;  %v1811_v23 = vpack.c.bf16 %v1177_v17, %v1167_v11  ;;  %v2019_v24 = vpop.permute.xlu1 %2018  ;;  %v1817_v39 = vpack.c.bf16 %v1188_v27, %v2903_v18  ;;  %v1209_v37 = vsel %vm3291_vm0, %v2026_v32, %v2025_v15  ;;  %vm3294_vm6 = vmmov %vm3291_vm0  ;;  %v1217_v43 = vpop.permute.xlu0 %1216 }
 0x3be   : > { %v2021_v28 = vunpack.i.h.bf16 %v2019_v24  ;;  %v2020_v29 = vunpack.i.l.bf16 %v2019_v24  ;;  %v1208_v46 = vsel %vm3294_vm6, %v2025_v15, %v2026_v32 }
 0x3bf   : > { %1810 = vmatprep.subr.msk.bf16.mxu1 %vm3268_vm8, %v1808_v21  ;;  %vm3293_vm8 = vnez %v3211_v5  ;;  %v1224_v5 = vld [vmem:[%s3105_s5] sm:$0xff] }
 0x3c0   : > { %v1199_v19 = vsel %vm3290_vm9, %v2021_v28, %v2020_v29  ;;  %1813 = vmatpush1.bf16.msk.msra.mxu1 %vm3269_vm14, %v1811_v23  ;;  %v1198_v38 = vsel %vm3292_vm13, %v2020_v29, %v2021_v28  ;;  %vm3295_vm14 = vnez %v3216_v10 }
 0x3c1   : > { %1816 = vmatprep.subr.msk.bf16.mxu1 %vm3270_vm11, %v1814_v31  ;;  %v1820_v42 = vpack.c.bf16 %v1209_v37, %v1199_v19  ;;  %v1215_v54 = vpop.permute.xlu1 %1214  ;;  %v1823_v58 = vpack.c.bf16 %v1208_v46, %v1198_v38  ;;  %vm3296_vm11 = vcmp.lt.s32.totalorder %v2442_v8, 111 }
 0x3c2   : > { %v1219_v44 = vsel %vm3296_vm11, %v1217_v43, %v1215_v54  ;;  %vm3298_vm3 = vmmov %vm3296_vm11 }
 0x3c3   : > { %v1218_v45 = vsel %vm3298_vm3, %v1215_v54, %v1217_v43 }
 0x3c4   : > { %1819 = vmatpush1.bf16.msk.msra.mxu1 %vm3293_vm8, %v1817_v39 }
 0x3c5   : > { %1822 = vmatprep.subr.msk.bf16.mxu1 %vm3295_vm14, %v1820_v42 }
 0x3c8   : > { %1825 = vmatpush1.bf16.msk.msra.mxu1 %vm3297_vm7, %v1823_v58 }
 0x3c9   : > { %1668 = vmatprep.subr.msk.mxu1 %vm2668_vm2, %v1219_v44  ;;  %vm3299_vm2 = vcmask 64512  }
 0x3cc   : > { %1669 = vmatpush1.msk.msra.mxu1 %vm2683_vm1, %v1218_v45 }
 0x3cd   : > { %1355 = vmatmul.mubr.f32.vlgmr.msra.gmra.mrb[2].mxu1 %v1224_v5 }
 0x3ce   : > { %v479_v10 = vpop.permute.xlu0 %478 }
 0x3cf   : > { %v481_v18 = vadd.f32 %v479_v10, %v2415_v1  ;;  %v482_v16 = vadd.f32 %v479_v10, %v2417_v2  ;;  %v1363_v1 = vld [vmem:[%s3110_s10] sm:$0xff] }
 0x3d1   : > { %v559_v49 = vadd.f32 %v2713_v25, %v481_v18  ;;  %v560_v53 = vadd.f32 %v2715_v26, %v482_v16 }
 0x3d2   : > { %v1284_v40 = vpop.permute.xlu1 %1283 }
 0x413   : > { %v1135_v20 = vpop.f32.mrb[0].mxu1 }
 0x414   : > { %v1827_v35 = vadd.f32 %v1135_v20, %v559_v49  ;;  %v1137_v0 = vpop.f32.mrb[1].mxu1 }
 0x415   : > { %v1830_v8 = vadd.f32 %v1137_v0, %v560_v53 }
 0x4a0   : > { %v1356_v41 = vpop.f32.mrb[2].mxu1 }
 0x4a1   : > { %v1357_v22 = vadd.f32 %v1356_v41, %v1284_v40  ;;  %v1358_v51 = vpop.f32.mrb[3].mxu1 }
 0x4a2   : > { %v1359_v56 = vadd.f32 %v1358_v51, %v1284_v40 }
 0x4a3   : > { %v1361_v3 = vmax.f32 %v1357_v22, 0.0 }
 0x4a4   : > { %v1362_v59 = vmax.f32 %v1359_v56, 0.0 }
 0x4a6   : > { %1367 = vmatprep.subr.mxu0 %v1362_v59 }
 0x4a7   : > { %1368 = vmatpush1.msra.mxu0 %v1361_v3 }
 0x4a8   : > { %1566 = vmatmul.mubr.msk.f32.vlgmr.msra.gmra.mrb[6].mxu0 %vm3299_vm2, %v1363_v1 }
 0x57b   : > { %v1433_v2 = vpop.f32.mrb[6].mxu0 }
 0x57c   : > { %v1828_v25 = vadd.f32 %v1827_v35, %v1433_v2  ;;  %v1435_v26 = vpop.f32.mrb[7].mxu0 }
 0x57d   : > { %v1831_v9 = vadd.f32 %v1830_v8, %v1435_v26 }
 0x57e   : > { %1440 = vst [vmem:[%s444_s24] sm:$0xff] %v1828_v25 }
 0x57f   : > { %1441 = vst [vmem:[%s444_s24 + $0x8] sm:$0xff] %v1831_v9 }
 0x580   : > { %2124 = shalt.err (!%p2121_p11)
}
 0x581   : > { %s2125_s17 = scalar_lea.hbm %s3058_s29, 256  ;;  %s2129_s28 = scalar_lea.hbm %s3112_s12, 512 }
 0x582   : > { %p2126_p13 = scmp.ne.s32.totalorder %s3058_s29, %s2125_s17  ;;  %p2130_p6 = scmp.lt.u32.totalorder %s3058_s29, %s3112_s12 }
 0x583   : > { %p2131_p5 = scmp.lt.u32.totalorder %s2129_s28, %s2125_s17  ;;  %p2133_p12 = scmp.lt.u32.totalorder %s2125_s17, %s3058_s29 }
 0x584   : > { %p2127_p1 = pnand %p2126_p13, %p3300_p10 }
 0x585   : > { %p2132_p9 = por %p2131_p5, %p2130_p6 }
 0x586   : > { %p2128_p0 = pneg %p2127_p1 }
 0x587   : > { %p2134_p2 = por %p2133_p12, %p2132_p9 }
 0x589   : > { %p2135_p3 = pnand %p2134_p2, %p2128_p0 }
 0x58b   : > { %2138 = shalt.err (!%p2135_p3)
}
 0x58c   : > { %1846 = dma.vmem_to_hbm [thread:$0]  (%p3300_p10), %s3060_s23, 256, %s3058_s29, %s1443_s26  }
 0x58d PF: > { %s3301_s24 = sld [smem:[#allocation15_spill]]  ;;  %s3302_s27 = sld [smem:[#allocation13_spill]] }
 0x58e   : > { %s3303_s14 = sld [smem:[#allocation18_spill]] }
 0x593   : > { %p1868_p4 = scmp.ge.s32.totalorder %s3301_s24, 2  ;;  %s1469_s25 = sand.u32 1, %s3302_s27  }
 0x594   : > { %p3304_p7 = scmp.ne.s32.totalorder %s3303_s14, 0  ;;  %s1470_s16 = scalar_lea.sflag [#allocation5], %s1469_s25 }
 0x596   : > { %p1859_p8 = pnand %p1868_p4, %p3304_p7 }
 0x598   : > { %2164 = dma.done.wait (!%p1859_p8), %s1470_s16, 256  }
 0x599   : > { %2166 = vsyncadd (!%p1859_p8), %s1470_s16, 4294967040  ;;  %s3305_s24 = sld [smem:[#allocation16_spill]]  ;;  %s3306_s30 = sld [smem:[#allocation14_spill]] }
 0x59a   : > { %s3307_s23 = sld [smem:[#allocation17_spill]]  ;;  %s3308_s21 = smov %s2173_s22 }
 0x59f   : > { %p24_p11 = scmp.ge.s32.totalorder %s3305_s24, 4   ;;  %s3309_s22 = smov %s3306_s30 }
 0x5a1   :  { %26 = sbr.rel (!%p24_p11) target bundleno = 5 (0x5), region = 116 }
 0x5a8   :  { %1475 = vsyncpa [#allocation4], 1 }
 0x5a9   :  { %1477 = vsyncpa [#allocation4 + $0x1], 1 }
 0x5aa   :  { %1478 = vsyncpa [#allocation7], 1 }
 0x5ab   :  { %1479 = vsyncpa [#allocation5], 1 }
 0x5ac   :  { %1481 = vsyncpa [#allocation5 + $0x1], 1 }

</bundles_post_ra>
